<compile_context>
chip_gen: v6e
topology: v6e:2x2x1
jax: 0.10.0
libtpu: 0.0.40
codegen_flags: <defaults>
</compile_context>

<pallas_src>
import functools

import jax
import jax.numpy as jnp
from jax import lax
from jax.experimental import pallas as pl
from jax.experimental.pallas import tpu as pltpu


def _layer_kernel(*refs, H, W, C, Cout, dil, num_src, pad_output):
    # refs = [src_0, ..., src_{num_src-1}, w, params, out, acc_scratch]
    # src_s block:  (1, H, W + 2, C)      -- width already zero-padded by 1/1
    # w:            (num_src * 6, C, Cout) -- tap index = s*6 + kh*3 + kw
    # params:       (4, Cout)              -- [bias, gamma, beta, alpha]
    src_refs = refs[:num_src]
    w_ref = refs[num_src]
    p_ref = refs[num_src + 1]
    out_ref = refs[num_src + 2]
    acc_ref = refs[num_src + 3]          # VMEM scratch (H, W, Cout) f32

    prm = p_ref[...]                     # (4, Cout)
    bias, gamma, beta, alpha = prm[0], prm[1], prm[2], prm[3]

    acc1 = jnp.zeros((H, W, Cout), jnp.float32)   # kh = 1 taps (no time shift)
    acc0 = jnp.zeros((H, W, Cout), jnp.float32)   # kh = 0 taps (pre-shift)
    for s in range(num_src):
        xs = src_refs[s][0]                        # (H, W + 2, C)
        for kw in range(3):
            xw = xs[:, kw:kw + W, :]               # (H, W, C), W-shifted view
            acc1 = acc1 + jnp.einsum(
                'hwi,io->hwo', xw, w_ref[s * 6 + 3 + kw],
                preferred_element_type=jnp.float32)
            acc0 = acc0 + jnp.einsum(
                'hwi,io->hwo', xw, w_ref[s * 6 + kw],
                preferred_element_type=jnp.float32)

    # Causal (dilated) time pad: output row h gets the kh=0 tap from input row
    # h - dil; rows h < dil read the zero pad and contribute nothing.
    acc_ref[...] = acc1 + bias
    if dil < H:
        acc_ref[pl.ds(dil, H - dil), :, :] = (
            acc_ref[pl.ds(dil, H - dil), :, :] + acc0[:H - dil])
    acc = acc_ref[...]

    # InstanceNorm2d: biased variance over (H, W), eps=1e-5, fused affine.
    inv_hw = 1.0 / float(H * W)
    mean = jnp.sum(acc, axis=(0, 1), keepdims=True) * inv_hw
    ex2 = jnp.sum(acc * acc, axis=(0, 1), keepdims=True) * inv_hw
    var = ex2 - mean * mean
    scale = gamma * lax.rsqrt(var + 1e-5)          # (1, 1, Cout)
    shift = beta - mean * scale
    y = acc * scale + shift

    # Per-channel PReLU.
    y = jnp.where(y >= 0, y, alpha * y)
    y = y.astype(out_ref.dtype)

    if pad_output:
        # Store with the (1, 1) width pad baked in (zero side columns) so the
        # consuming layer never needs a wrapper-side pad.
        out_ref[...] = jnp.zeros_like(out_ref)
        out_ref[0, :, pl.ds(1, W), :] = y
    else:
        out_ref[0] = y


def _vmem_limit_bytes(num_src, H, Wp, C, Cout, out_w):
    f32 = 4
    est = 0
    est += 2 * num_src * H * Wp * C * f32      # double-buffered source blocks
    est += 2 * num_src * 6 * C * Cout * f32    # weights
    est += 2 * 4 * Cout * f32                  # packed per-channel params
    est += 2 * H * out_w * Cout * f32          # output block
    est += H * (Wp - 2) * Cout * f32           # accumulator scratch
    est = int(est * 2) + (2 << 20)             # headroom for temporaries
    return int(min(max(est, 32 * 1024 * 1024), 64 * 1024 * 1024))


def dilated_layer(sources, w_hwio, pvec, dil, *, pad_output):
    """One dense layer: causal dilated 2x3 conv + InstanceNorm2d + PReLU.

    sources: list of NHWC activations, each already width-padded to W + 2
      (zero columns at w = 0 and w = W + 1), ordered newest-first with the
      original input last -- matching torch.cat([out, skip], dim=1).
    """
    num_src = len(sources)
    N, H, Wp, C = sources[0].shape
    W = Wp - 2
    Cout = w_hwio.shape[-1]
    assert w_hwio.shape == (2, 3, num_src * C, Cout)

    # (2, 3, num_src*C, Cout) -> (num_src*6, C, Cout); tap = s*6 + kh*3 + kw.
    w_stack = (w_hwio.reshape(2, 3, num_src, C, Cout)
               .transpose(2, 0, 1, 3, 4)
               .reshape(num_src * 6, C, Cout))

    out_w = Wp if pad_output else W

    kern = functools.partial(_layer_kernel, H=H, W=W, C=C, Cout=Cout, dil=dil,
                             num_src=num_src, pad_output=pad_output)

    src_spec = pl.BlockSpec((1, H, Wp, C), lambda n: (n, 0, 0, 0))
    in_specs = [src_spec] * num_src + [
        pl.BlockSpec((num_src * 6, C, Cout), lambda n: (0, 0, 0)),
        pl.BlockSpec((4, Cout), lambda n: (0, 0)),
    ]

    return pl.pallas_call(
        kern,
        out_shape=jax.ShapeDtypeStruct((N, H, out_w, Cout), jnp.float32),
        grid=(N,),
        in_specs=in_specs,
        out_specs=pl.BlockSpec((1, H, out_w, Cout), lambda n: (n, 0, 0, 0)),
        scratch_shapes=[pltpu.VMEM((H, W, Cout), jnp.float32)],
        compiler_params=pltpu.CompilerParams(
            dimension_semantics=("parallel",),
            vmem_limit_bytes=_vmem_limit_bytes(num_src, H, Wp, C, Cout, out_w)),
    )(*sources, w_stack, pvec)


def init_params(key, depth, channels):
    """Deterministic synthetic parameters matching the module's shapes."""
    params = []
    for i in range(depth):
        cin = channels * (i + 1)
        key, k1, k2, k3, k4 = jax.random.split(key, 5)
        fan_in = cin * 2 * 3
        bound = 1.0 / jnp.sqrt(jnp.float32(fan_in))
        # Conv2d weight (PyTorch OIHW (C, cin, 2, 3)) stored directly as HWIO.
        w = jax.random.uniform(k1, (2, 3, cin, channels), jnp.float32,
                               -bound, bound)
        b = jax.random.uniform(k2, (channels,), jnp.float32, -bound, bound)
        # InstanceNorm2d(affine=True) params (perturbed so the test is non-trivial).
        gamma = 1.0 + 0.1 * jax.random.normal(k3, (channels,), jnp.float32)
        beta = 0.1 * jax.random.normal(k4, (channels,), jnp.float32)
        # PReLU default init.
        alpha = jnp.full((channels,), 0.25, jnp.float32)
        pvec = jnp.stack([b, gamma, beta, alpha], axis=0)   # (4, C)
        params.append(dict(w=w, b=b, gamma=gamma, beta=beta, alpha=alpha,
                           pvec=pvec, dil=2 ** i))
    return params


def dilated_dense_net(x_nchw, params):
    """Forward pass. Input / output are NCHW to match PyTorch semantics."""
    x = jnp.transpose(x_nchw, (0, 2, 3, 1))                 # NCHW -> NHWC
    # One-time width pad of the network input; all later activations are
    # produced pre-padded by the layer kernels themselves (no per-layer pad,
    # no HBM concat).
    sources = [jnp.pad(x, ((0, 0), (0, 0), (1, 1), (0, 0)))]
    depth = len(params)
    out = None
    for i, p in enumerate(params):
        last = i == depth - 1
        out = dilated_layer(sources, p['w'], p['pvec'], p['dil'],
                            pad_output=not last)
        if not last:
            sources = [out] + sources        # dense connectivity, newest first
    return jnp.transpose(out, (0, 3, 1, 2))                  # NHWC -> NCHW


# -------------------- pure-JAX reference for verification --------------------
def _ref_layer(x, w, b, gamma, beta, alpha, dil):
    xpad = jnp.pad(x, ((0, 0), (dil, 0), (1, 1), (0, 0)))
    y = lax.conv_general_dilated(
        xpad, w, window_strides=(1, 1), padding='VALID',
        rhs_dilation=(dil, 1), dimension_numbers=('NHWC', 'HWIO', 'NHWC'))
    y = y + b
    mean = jnp.mean(y, axis=(1, 2), keepdims=True)
    var = jnp.mean((y - mean) ** 2, axis=(1, 2), keepdims=True)
    y = (y - mean) * lax.rsqrt(var + 1e-5)
    y = y * gamma + beta
    return jnp.where(y >= 0, y, alpha * y)


def _ref_net(x_nchw, params):
    skip = jnp.transpose(x_nchw, (0, 2, 3, 1))
    out = None
    for p in params:
        out = _ref_layer(skip, p['w'], p['b'], p['gamma'], p['beta'],
                         p['alpha'], p['dil'])
        skip = jnp.concatenate([out, skip], axis=-1)
    return jnp.transpose(out, (0, 3, 1, 2))


if __name__ == "__main__":
    key = jax.random.PRNGKey(0)
    key, pkey, xkey = jax.random.split(key, 3)

    depth = 4
    in_channels = 4
    N, H, W = 2, 16, 16

    params = init_params(pkey, depth, in_channels)
    x = jax.random.normal(xkey, (N, in_channels, H, W), jnp.float32)  # NCHW

    out = dilated_dense_net(x, params)
    out = jax.block_until_ready(out)
    assert out.shape == (N, in_channels, H, W), out.shape

    ref = jax.block_until_ready(_ref_net(x, params))
    assert jnp.allclose(out, ref, rtol=1e-3, atol=1e-3), (
        float(jnp.max(jnp.abs(out - ref))))

    print("KERNEL_OK")
</pallas_src>

<mosaic_0001>
module attributes {stable_mosaic.version = 11 : i64} {
  func.func @_layer_kernel(%arg0: i32, %arg1: memref<1x16x18x4xf32, #tpu.memory_space<vmem>>, %arg2: memref<6x4x4xf32, #tpu.memory_space<vmem>>, %arg3: memref<4x4xf32, #tpu.memory_space<vmem>>, %arg4: memref<1x16x18x4xf32, #tpu.memory_space<vmem>>, %arg5: memref<16x16x4xf32, #tpu.memory_space<vmem>>) attributes {dimension_semantics = [#tpu.dimension_semantics<parallel>], iteration_bounds = array<i64: 2>, scalar_prefetch = 0 : i64, scratch_operands = 1 : i64, tpu.core_type = #tpu.core_type<tc>, window_params = [{transform_indices = @transform_0, window_bounds = array<i64: 1, 16, 18, 4>}, {pipeline_mode = #tpu.pipeline_mode<synchronous>, transform_indices = @transform_1, window_bounds = array<i64: 6, 4, 4>}, {pipeline_mode = #tpu.pipeline_mode<synchronous>, transform_indices = @transform_2, window_bounds = array<i64: 4, 4>}, {transform_indices = @transform_3, window_bounds = array<i64: 1, 16, 18, 4>}]} {
    %c0 = arith.constant 0 : index
    %c0_0 = arith.constant 0 : index
    %0 = vector.load %arg3[%c0, %c0_0] : memref<4x4xf32, #tpu.memory_space<vmem>>, vector<4x4xf32>
    %1 = vector.extract_strided_slice %0 {offsets = [0, 0], sizes = [1, 4], strides = [1, 1]} : vector<4x4xf32> to vector<1x4xf32>
    %2 = vector.shape_cast %1 : vector<1x4xf32> to vector<4xf32>
    %3 = vector.extract_strided_slice %0 {offsets = [1, 0], sizes = [1, 4], strides = [1, 1]} : vector<4x4xf32> to vector<1x4xf32>
    %4 = vector.shape_cast %3 : vector<1x4xf32> to vector<4xf32>
    %5 = vector.extract_strided_slice %0 {offsets = [2, 0], sizes = [1, 4], strides = [1, 1]} : vector<4x4xf32> to vector<1x4xf32>
    %6 = vector.shape_cast %5 : vector<1x4xf32> to vector<4xf32>
    %7 = vector.extract_strided_slice %0 {offsets = [3, 0], sizes = [1, 4], strides = [1, 1]} : vector<4x4xf32> to vector<1x4xf32>
    %8 = vector.shape_cast %7 : vector<1x4xf32> to vector<4xf32>
    %cst = arith.constant 0.000000e+00 : f32
    %9 = vector.broadcast %cst : f32 to vector<16x16x4xf32>
    %cst_1 = arith.constant 0.000000e+00 : f32
    %10 = vector.broadcast %cst_1 : f32 to vector<16x16x4xf32>
    %c0_2 = arith.constant 0 : index
    %c0_3 = arith.constant 0 : index
    %c0_4 = arith.constant 0 : index
    %c0_5 = arith.constant 0 : index
    %11 = vector.load %arg1[%c0_2, %c0_3, %c0_4, %c0_5] : memref<1x16x18x4xf32, #tpu.memory_space<vmem>>, vector<1x16x18x4xf32>
    %12 = vector.shape_cast %11 : vector<1x16x18x4xf32> to vector<16x18x4xf32>
    %13 = vector.extract_strided_slice %12 {offsets = [0, 0, 0], sizes = [16, 16, 4], strides = [1, 1, 1]} : vector<16x18x4xf32> to vector<16x16x4xf32>
    %c3 = arith.constant 3 : index
    %c0_6 = arith.constant 0 : index
    %c0_7 = arith.constant 0 : index
    %14 = vector.load %arg2[%c3, %c0_6, %c0_7] : memref<6x4x4xf32, #tpu.memory_space<vmem>>, vector<1x4x4xf32>
    %15 = vector.shape_cast %14 : vector<1x4x4xf32> to vector<4x4xf32>
    "tpu.trace_start"() <{level = 10 : i32, message = "hwi,io->hwo"}> : () -> ()
    %cst_8 = arith.constant dense<0.000000e+00> : vector<16x16x4xf32>
    %16 = tpu.matmul %13, %15, %cst_8 {dimension_numbers = #tpu.dot_dimension_numbers<[2], [0], [0, 1], [1], [0, 0, 0, 1, 1, 1], [], []>} : vector<16x16x4xf32>, vector<4x4xf32>, vector<16x16x4xf32> -> vector<16x16x4xf32>
    "tpu.trace_stop"() : () -> ()
    %17 = arith.addf %9, %16 : vector<16x16x4xf32>
    %c0_9 = arith.constant 0 : index
    %c0_10 = arith.constant 0 : index
    %c0_11 = arith.constant 0 : index
    %18 = vector.load %arg2[%c0_9, %c0_10, %c0_11] : memref<6x4x4xf32, #tpu.memory_space<vmem>>, vector<1x4x4xf32>
    %19 = vector.shape_cast %18 : vector<1x4x4xf32> to vector<4x4xf32>
    "tpu.trace_start"() <{level = 10 : i32, message = "hwi,io->hwo"}> : () -> ()
    %cst_12 = arith.constant dense<0.000000e+00> : vector<16x16x4xf32>
    %20 = tpu.matmul %13, %19, %cst_12 {dimension_numbers = #tpu.dot_dimension_numbers<[2], [0], [0, 1], [1], [0, 0, 0, 1, 1, 1], [], []>} : vector<16x16x4xf32>, vector<4x4xf32>, vector<16x16x4xf32> -> vector<16x16x4xf32>
    "tpu.trace_stop"() : () -> ()
    %21 = arith.addf %10, %20 : vector<16x16x4xf32>
    %22 = vector.extract_strided_slice %12 {offsets = [0, 1, 0], sizes = [16, 16, 4], strides = [1, 1, 1]} : vector<16x18x4xf32> to vector<16x16x4xf32>
    %c4 = arith.constant 4 : index
    %c0_13 = arith.constant 0 : index
    %c0_14 = arith.constant 0 : index
    %23 = vector.load %arg2[%c4, %c0_13, %c0_14] : memref<6x4x4xf32, #tpu.memory_space<vmem>>, vector<1x4x4xf32>
    %24 = vector.shape_cast %23 : vector<1x4x4xf32> to vector<4x4xf32>
    "tpu.trace_start"() <{level = 10 : i32, message = "hwi,io->hwo"}> : () -> ()
    %cst_15 = arith.constant dense<0.000000e+00> : vector<16x16x4xf32>
    %25 = tpu.matmul %22, %24, %cst_15 {dimension_numbers = #tpu.dot_dimension_numbers<[2], [0], [0, 1], [1], [0, 0, 0, 1, 1, 1], [], []>} : vector<16x16x4xf32>, vector<4x4xf32>, vector<16x16x4xf32> -> vector<16x16x4xf32>
    "tpu.trace_stop"() : () -> ()
    %26 = arith.addf %17, %25 : vector<16x16x4xf32>
    %c1 = arith.constant 1 : index
    %c0_16 = arith.constant 0 : index
    %c0_17 = arith.constant 0 : index
    %27 = vector.load %arg2[%c1, %c0_16, %c0_17] : memref<6x4x4xf32, #tpu.memory_space<vmem>>, vector<1x4x4xf32>
    %28 = vector.shape_cast %27 : vector<1x4x4xf32> to vector<4x4xf32>
    "tpu.trace_start"() <{level = 10 : i32, message = "hwi,io->hwo"}> : () -> ()
    %cst_18 = arith.constant dense<0.000000e+00> : vector<16x16x4xf32>
    %29 = tpu.matmul %22, %28, %cst_18 {dimension_numbers = #tpu.dot_dimension_numbers<[2], [0], [0, 1], [1], [0, 0, 0, 1, 1, 1], [], []>} : vector<16x16x4xf32>, vector<4x4xf32>, vector<16x16x4xf32> -> vector<16x16x4xf32>
    "tpu.trace_stop"() : () -> ()
    %30 = arith.addf %21, %29 : vector<16x16x4xf32>
    %31 = vector.extract_strided_slice %12 {offsets = [0, 2, 0], sizes = [16, 16, 4], strides = [1, 1, 1]} : vector<16x18x4xf32> to vector<16x16x4xf32>
    %c5 = arith.constant 5 : index
    %c0_19 = arith.constant 0 : index
    %c0_20 = arith.constant 0 : index
    %32 = vector.load %arg2[%c5, %c0_19, %c0_20] : memref<6x4x4xf32, #tpu.memory_space<vmem>>, vector<1x4x4xf32>
    %33 = vector.shape_cast %32 : vector<1x4x4xf32> to vector<4x4xf32>
    "tpu.trace_start"() <{level = 10 : i32, message = "hwi,io->hwo"}> : () -> ()
    %cst_21 = arith.constant dense<0.000000e+00> : vector<16x16x4xf32>
    %34 = tpu.matmul %31, %33, %cst_21 {dimension_numbers = #tpu.dot_dimension_numbers<[2], [0], [0, 1], [1], [0, 0, 0, 1, 1, 1], [], []>} : vector<16x16x4xf32>, vector<4x4xf32>, vector<16x16x4xf32> -> vector<16x16x4xf32>
    "tpu.trace_stop"() : () -> ()
    %35 = arith.addf %26, %34 : vector<16x16x4xf32>
    %c2 = arith.constant 2 : index
    %c0_22 = arith.constant 0 : index
    %c0_23 = arith.constant 0 : index
    %36 = vector.load %arg2[%c2, %c0_22, %c0_23] : memref<6x4x4xf32, #tpu.memory_space<vmem>>, vector<1x4x4xf32>
    %37 = vector.shape_cast %36 : vector<1x4x4xf32> to vector<4x4xf32>
    "tpu.trace_start"() <{level = 10 : i32, message = "hwi,io->hwo"}> : () -> ()
    %cst_24 = arith.constant dense<0.000000e+00> : vector<16x16x4xf32>
    %38 = tpu.matmul %31, %37, %cst_24 {dimension_numbers = #tpu.dot_dimension_numbers<[2], [0], [0, 1], [1], [0, 0, 0, 1, 1, 1], [], []>} : vector<16x16x4xf32>, vector<4x4xf32>, vector<16x16x4xf32> -> vector<16x16x4xf32>
    "tpu.trace_stop"() : () -> ()
    %39 = arith.addf %30, %38 : vector<16x16x4xf32>
    %40 = vector.shape_cast %2 : vector<4xf32> to vector<1x1x4xf32>
    %41 = vector.broadcast %40 : vector<1x1x4xf32> to vector<16x16x4xf32>
    %42 = arith.addf %35, %41 : vector<16x16x4xf32>
    %c0_25 = arith.constant 0 : index
    %c0_26 = arith.constant 0 : index
    %c0_27 = arith.constant 0 : index
    %43 = vector.load %arg5[%c0_25, %c0_26, %c0_27] : memref<16x16x4xf32, #tpu.memory_space<vmem>>, vector<16x16x4xf32>
    tpu.vector_store %arg5[%c0_25, %c0_26, %c0_27], %42 {strides = array<i32>} : memref<16x16x4xf32, #tpu.memory_space<vmem>>, vector<16x16x4xf32>,
    %c1_28 = arith.constant 1 : index
    %c0_29 = arith.constant 0 : index
    %c0_30 = arith.constant 0 : index
    %44 = vector.load %arg5[%c1_28, %c0_29, %c0_30] : memref<16x16x4xf32, #tpu.memory_space<vmem>>, vector<15x16x4xf32>
    %45 = vector.extract_strided_slice %39 {offsets = [0, 0, 0], sizes = [15, 16, 4], strides = [1, 1, 1]} : vector<16x16x4xf32> to vector<15x16x4xf32>
    %46 = arith.addf %44, %45 : vector<15x16x4xf32>
    %c1_31 = arith.constant 1 : index
    %c0_32 = arith.constant 0 : index
    %c0_33 = arith.constant 0 : index
    %47 = vector.load %arg5[%c1_31, %c0_32, %c0_33] : memref<16x16x4xf32, #tpu.memory_space<vmem>>, vector<15x16x4xf32>
    tpu.vector_store %arg5[%c1_31, %c0_32, %c0_33], %46 {strides = array<i32>} : memref<16x16x4xf32, #tpu.memory_space<vmem>>, vector<15x16x4xf32>,
    %c0_34 = arith.constant 0 : index
    %c0_35 = arith.constant 0 : index
    %c0_36 = arith.constant 0 : index
    %48 = vector.load %arg5[%c0_34, %c0_35, %c0_36] : memref<16x16x4xf32, #tpu.memory_space<vmem>>, vector<16x16x4xf32>
    %cst_37 = arith.constant dense<0.000000e+00> : vector<4xf32>
    %49 = vector.multi_reduction <add>, %48, %cst_37 [0, 1] : vector<16x16x4xf32> to vector<4xf32>
    %50 = vector.shape_cast %49 : vector<4xf32> to vector<1x1x4xf32>
    %cst_38 = arith.constant 3.906250e-03 : f32
    %51 = vector.broadcast %cst_38 : f32 to vector<1x1x4xf32>
    %52 = arith.mulf %50, %51 : vector<1x1x4xf32>
    %53 = arith.mulf %48, %48 : vector<16x16x4xf32>
    %cst_39 = arith.constant dense<0.000000e+00> : vector<4xf32>
    %54 = vector.multi_reduction <add>, %53, %cst_39 [0, 1] : vector<16x16x4xf32> to vector<4xf32>
    %55 = vector.shape_cast %54 : vector<4xf32> to vector<1x1x4xf32>
    %cst_40 = arith.constant 3.906250e-03 : f32
    %56 = vector.broadcast %cst_40 : f32 to vector<1x1x4xf32>
    %57 = arith.mulf %55, %56 : vector<1x1x4xf32>
    %58 = arith.mulf %52, %52 : vector<1x1x4xf32>
    %59 = arith.subf %57, %58 : vector<1x1x4xf32>
    %cst_41 = arith.constant 9.99999974E-6 : f32
    %60 = vector.broadcast %cst_41 : f32 to vector<1x1x4xf32>
    %61 = arith.addf %59, %60 : vector<1x1x4xf32>
    %62 = math.rsqrt %61 : vector<1x1x4xf32>
    %63 = vector.shape_cast %4 : vector<4xf32> to vector<1x1x4xf32>
    %64 = arith.mulf %63, %62 : vector<1x1x4xf32>
    %65 = arith.mulf %52, %64 : vector<1x1x4xf32>
    %66 = vector.shape_cast %6 : vector<4xf32> to vector<1x1x4xf32>
    %67 = arith.subf %66, %65 : vector<1x1x4xf32>
    %68 = vector.broadcast %64 : vector<1x1x4xf32> to vector<16x16x4xf32>
    %69 = arith.mulf %48, %68 : vector<16x16x4xf32>
    %70 = vector.broadcast %67 : vector<1x1x4xf32> to vector<16x16x4xf32>
    %71 = arith.addf %69, %70 : vector<16x16x4xf32>
    %cst_42 = arith.constant 0.000000e+00 : f32
    %72 = vector.broadcast %cst_42 : f32 to vector<16x16x4xf32>
    %73 = arith.cmpf oge, %71, %72 : vector<16x16x4xf32>
    %74 = vector.shape_cast %8 : vector<4xf32> to vector<1x1x4xf32>
    %75 = vector.broadcast %74 : vector<1x1x4xf32> to vector<16x16x4xf32>
    %76 = arith.mulf %75, %71 : vector<16x16x4xf32>
    %77 = arith.select %73, %71, %76 : vector<16x16x4xi1>, vector<16x16x4xf32>
    %cst_43 = arith.constant 0.000000e+00 : f32
    %78 = vector.broadcast %cst_43 : f32 to vector<1x16x18x4xf32>
    %c0_44 = arith.constant 0 : index
    %c0_45 = arith.constant 0 : index
    %c0_46 = arith.constant 0 : index
    %c0_47 = arith.constant 0 : index
    %79 = vector.load %arg4[%c0_44, %c0_45, %c0_46, %c0_47] : memref<1x16x18x4xf32, #tpu.memory_space<vmem>>, vector<1x16x18x4xf32>
    tpu.vector_store %arg4[%c0_44, %c0_45, %c0_46, %c0_47], %78 {strides = array<i32>} : memref<1x16x18x4xf32, #tpu.memory_space<vmem>>, vector<1x16x18x4xf32>,
    %c0_48 = arith.constant 0 : index
    %c0_49 = arith.constant 0 : index
    %c1_50 = arith.constant 1 : index
    %c0_51 = arith.constant 0 : index
    %80 = vector.load %arg4[%c0_48, %c0_49, %c1_50, %c0_51] : memref<1x16x18x4xf32, #tpu.memory_space<vmem>>, vector<1x16x16x4xf32>
    %81 = vector.shape_cast %80 : vector<1x16x16x4xf32> to vector<16x16x4xf32>
    %82 = vector.shape_cast %77 : vector<16x16x4xf32> to vector<1x16x16x4xf32>
    tpu.vector_store %arg4[%c0_48, %c0_49, %c1_50, %c0_51], %82 {strides = array<i32>} : memref<1x16x18x4xf32, #tpu.memory_space<vmem>>, vector<1x16x16x4xf32>,
    return
  }
  func.func @transform_0(%arg0: i32) -> (i32, i32, i32, i32) {
    %c0_i32 = arith.constant 0 : i32
    %c0_i32_0 = arith.constant 0 : i32
    %c0_i32_1 = arith.constant 0 : i32
    %c0_i32_2 = arith.constant 0 : i32
    return %arg0, %c0_i32, %c0_i32_0, %c0_i32_1 : i32, i32, i32, i32
  }
  func.func @transform_1(%arg0: i32) -> (i32, i32, i32) {
    %c0_i32 = arith.constant 0 : i32
    %c0_i32_0 = arith.constant 0 : i32
    %c0_i32_1 = arith.constant 0 : i32
    %c0_i32_2 = arith.constant 0 : i32
    return %c0_i32, %c0_i32_0, %c0_i32_1 : i32, i32, i32
  }
  func.func @transform_2(%arg0: i32) -> (i32, i32) {
    %c0_i32 = arith.constant 0 : i32
    %c0_i32_0 = arith.constant 0 : i32
    %c0_i32_1 = arith.constant 0 : i32
    return %c0_i32, %c0_i32_0 : i32, i32
  }
  func.func @transform_3(%arg0: i32) -> (i32, i32, i32, i32) {
    %c0_i32 = arith.constant 0 : i32
    %c0_i32_0 = arith.constant 0 : i32
    %c0_i32_1 = arith.constant 0 : i32
    %c0_i32_2 = arith.constant 0 : i32
    return %arg0, %c0_i32, %c0_i32_0, %c0_i32_1 : i32, i32, i32, i32
  }
}

</mosaic_0001>

<bundles_post_ra>
// kernel: tpu_custom_call.1
= control target key start
LH: loop header
LB: loop body
LE: loop exit
PB: predicated region body
PF: predicated region fallthrough
CT: control target
= control target key end

     0   :  { %s3492_s12 = smov 0   ;;  %s5310_s0 = inlined_call_operand.vmem [shape: f32[2,16,18,4], index: 0, kind: input, shape index: {}]   ;;  %s5311_s1 = inlined_call_operand.vmem [shape: f32[6,4,4], index: 1, kind: input, shape index: {}]   ;;  %s5312_s2 = inlined_call_operand.vmem [shape: f32[4,4], index: 2, kind: input, shape index: {}]   ;;  %s5313_s3 = inlined_call_operand.vmem [shape: f32[2,16,18,4], index: 3, kind: output, shape index: {}]  }
   0x1 LB: > { %s2740_s13 = sadd.s32 4294967295, %s3469_s12   ;;  %p2744_p0 = scmp.ge.s32.totalorder %s3469_s12, 1  ;;  %s3469_s12 = sphi %s3492_s12, %s13_s12  }
   0x2   : > { %p137_p1 = scmp.lt.s32.totalorder %s3469_s12, 3 }
   0x4   : > { %p138_p2 = pnand %p2744_p0, %p137_p1 }
   0x6   : > { %141 = sbr.rel (%p138_p2) target bundleno = 560 (0x230), region = 32 }
   0xb   : > { %v2747_v0 = vld [vmem:[%s5311_s1 + $0xc] sm:$0xf]  ;;  %vm419_vm0 = vcmask 1043456   ;;  %p161_p3 = scmp.lt.s32.totalorder %s2740_s13, 1  ;;  %v2748_v1 = vld [vmem:[%s5311_s1 + $0x10] sm:$0xf] }
   0xc   : > { %3200 = vmatprep.subr.msk.mxu1 %vm419_vm0, %v2747_v0  ;;  %v2815_v2 = vld [vmem:[%s5311_s1 + $0x4] sm:$0xf]  ;;  %v222_v3 = vld [vmem:[%s5311_s1] sm:$0xf]  ;;  %3150 = vmatprep.subr.msk.mxu0 %vm419_vm0, %v2748_v1  ;;  %vm5342_vm1 = vcmask 31744   ;;  %vm273_vm2 = vcmask 1046528  }
   0xd   : > { %3201 = vmatpush3.msk.msra.mxu1 %vm419_vm0, %v2747_v0  ;;  %s5487_s13 = smov (!%p161_p3, %s2740_s13), 1  ;;  %3151 = vmatpush3.msk.msra.mxu0 %vm419_vm0, %v2748_v1  ;;  %v3550_v11 = vld [vmem:[%s5311_s1 + $0x8] sm:$0xf]  ;;  %v3599_v27 = vld [vmem:[%s5311_s1 + $0x14] sm:$0xf]  ;;  %vm1396_vm3 = vcmask 1045504  }
   0xe   : > { %3300 = vmatprep.subr.msk.mxu1 %vm419_vm0, %v222_v3  ;;  %s3450_s22 = smul.u32 384, %s5487_s13  ;;  %3250 = vmatprep.subr.msk.mxu0 %vm419_vm0, %v2815_v2  ;;  %vm2606_vm4 = vcmask 25600  }
  0x10   : > { %s3526_s25 = scalar_lea.vmem %s5310_s0, %s3450_s22  ;;  %s4713_s7 = scalar_lea.vmem %s5313_s3, %s3450_s22 }
  0x11   : > { %v3529_v4 = vld [vmem:[%s3526_s25] sm:$0xff]  ;;  %v3532_v5 = vld [vmem:[%s3526_s25 + $0x8] sm:$0xff]  ;;  %v3535_v6 = vld [vmem:[%s3526_s25 + $0x10] sm:$0x3] }
  0x12   : > { %5353 = vst [vmem:[#allocation3_spill] sm:$0xff] %v3535_v6  ;;  %3202 = vmatprep.mubr.msk.f32.mxu1 %vm5342_vm1, %v3529_v4  ;;  %v274_v7 = vrot.slane %v3529_v4, 1  ;;  %v275_v8 = vrot.slane %v3532_v5, 1  ;;  %v3542_v9 = vld [vmem:[%s3526_s25 + $0x18] sm:$0xff]  ;;  %v3545_v10 = vld [vmem:[%s3526_s25 + $0x20] sm:$0xff]  ;;  %v277_v12 = vrot.slane %v3535_v6, 1 }
  0x13   : > { %3203 = vmatmul.mubr.msk.f32.vlgmr.msra.gmra.mxu1 %vm5342_vm1, %v3532_v5  ;;  %v279_v13 = vrot.slane %v3542_v9, 1  ;;  %v3557_v14 = vld [vmem:[%s3526_s25 + $0x28] sm:$0x3]  ;;  %v280_v16 = vrot.slane %v3545_v10, 1  ;;  %v3567_v18 = vld [vmem:[%s3526_s25 + $0x30] sm:$0xff]  ;;  %v3570_v19 = vld [vmem:[%s3526_s25 + $0x38] sm:$0xff] }
  0x14   : > { %5354 = vst [vmem:[#allocation4_spill] sm:$0xff] %v3557_v14  ;;  %v3560_v15 = vsel %vm273_vm2, %v274_v7, %v275_v8  ;;  %3205 = vmatprep.mubr.msk.f32.mxu1 %vm5342_vm1, %v3542_v9  ;;  %v282_v17 = vrot.slane %v3557_v14, 1  ;;  %3301 = vmatpush3.msk.msra.mxu1 %vm419_vm0, %v222_v3  ;;  %v3576_v20 = vsel %vm273_vm2, %v275_v8, %v277_v12  ;;  %v284_v21 = vrot.slane %v3567_v18, 1  ;;  %v3581_v23 = vld [vmem:[%s3526_s25 + $0x40] sm:$0x3]  ;;  %v3584_v24 = vld [vmem:[%s3526_s25 + $0x48] sm:$0xff] }
  0x15   : > { %3152 = vmatprep.mubr.msk.f32.mxu0 %vm5342_vm1, %v3560_v15  ;;  %v285_v22 = vrot.slane %v3570_v19, 1  ;;  %5355 = vst [vmem:[#allocation5_spill] sm:$0xff] %v3581_v23  ;;  %v3587_v25 = vld [vmem:[%s3526_s25 + $0x50] sm:$0xff]  ;;  %3400 = vmatprep.subr.msk.mxu1 %vm419_vm0, %v3550_v11  ;;  %v3594_v26 = vsel %vm273_vm2, %v279_v13, %v280_v16  ;;  %v287_v29 = vrot.slane %v3581_v23, 1  ;;  %v289_v31 = vrot.slane %v3584_v24, 1  ;;  %v3621_v34 = vld [vmem:[%s3526_s25 + $0x60] sm:$0xff] }
  0x16   : > { %3153 = vmatmul.mubr.msk.f32.vlgmr.msra.gmra.mxu0 %vm5342_vm1, %v3576_v20  ;;  %v3605_v28 = vsel %vm273_vm2, %v280_v16, %v282_v17  ;;  %v290_v32 = vrot.slane %v3587_v25, 1  ;;  %v3618_v33 = vld [vmem:[%s3526_s25 + $0x58] sm:$0x3]  ;;  %v3624_v35 = vld [vmem:[%s3526_s25 + $0x68] sm:$0xff]  ;;  %v294_v39 = vrot.slane %v3621_v34, 1  ;;  %v3652_v43 = vld [vmem:[%s3526_s25 + $0x80] sm:$0xff] }
  0x17   : > { %3251 = vmatpush3.msk.msra.mxu0 %vm419_vm0, %v2815_v2  ;;  %3206 = vmatmul.mubr.msk.f32.gmra.mxu1 %vm5342_vm1, %v3545_v10  ;;  %v3613_v30 = vsel %vm273_vm2, %v284_v21, %v285_v22  ;;  %5356 = vst [vmem:[#allocation6_spill] sm:$0xff] %v3618_v33  ;;  %v3635_v36 = vsel %vm273_vm2, %v285_v22, %v287_v29  ;;  %v292_v37 = vrot.slane %v3618_v33, 1  ;;  %v295_v40 = vrot.slane %v3624_v35, 1  ;;  %v3646_v41 = vld [vmem:[%s3526_s25 + $0x70] sm:$0x3]  ;;  %v3649_v42 = vld [vmem:[%s3526_s25 + $0x78] sm:$0xff] }
  0x18   : > { %3155 = vmatprep.mubr.msk.f32.mxu0 %vm5342_vm1, %v3594_v26  ;;  %3208 = vmatprep.mubr.msk.f32.mxu1 %vm5342_vm1, %v3567_v18  ;;  %v3641_v38 = vsel %vm273_vm2, %v289_v31, %v290_v32  ;;  %5357 = vst [vmem:[#allocation7_spill] sm:$0xff] %v3646_v41  ;;  %v297_v45 = vrot.slane %v3646_v41, 1  ;;  %v299_v47 = vrot.slane %v3649_v42, 1  ;;  %v300_v48 = vrot.slane %v3652_v43, 1  ;;  %v3672_v49 = vld [vmem:[%s3526_s25 + $0x88] sm:$0x3] }
  0x19   : > { %3350 = vmatprep.subr.msk.mxu0 %vm419_vm0, %v3599_v27  ;;  %v3661_v44 = vsel %vm273_vm2, %v290_v32, %v292_v37  ;;  %v3667_v46 = vsel %vm273_vm2, %v294_v39, %v295_v40  ;;  %5358 = vst [vmem:[#allocation8_spill] sm:$0xff] %v3672_v49  ;;  %v3675_v50 = vld [vmem:[%s3526_s25 + $0x90] sm:$0xff]  ;;  %v3678_v51 = vld [vmem:[%s3526_s25 + $0x98] sm:$0xff]  ;;  %v302_v53 = vrot.slane %v3672_v49, 1  ;;  %v3698_v57 = vld [vmem:[%s3526_s25 + $0xa0] sm:$0x3] }
  0x1a   : > { %3156 = vmatmul.mubr.msk.f32.gmra.mxu0 %vm5342_vm1, %v3605_v28  ;;  %v3687_v52 = vsel %vm273_vm2, %v295_v40, %v297_v45  ;;  %v3693_v54 = vsel %vm273_vm2, %v299_v47, %v300_v48  ;;  %v304_v55 = vrot.slane %v3675_v50, 1  ;;  %v305_v56 = vrot.slane %v3678_v51, 1  ;;  %5359 = vst [vmem:[#allocation9_spill] sm:$0xff] %v3698_v57  ;;  %v3701_v58 = vld [vmem:[%s3526_s25 + $0xa8] sm:$0xff]  ;;  %v3704_v59 = vld [vmem:[%s3526_s25 + $0xb0] sm:$0xff]  ;;  %v3727_v2 = vld [vmem:[%s3526_s25 + $0xc0] sm:$0xff] }
  0x1b   : > { %3209 = vmatmul.mubr.msk.f32.gmra.mxu1 %vm5342_vm1, %v3570_v19  ;;  %3158 = vmatprep.mubr.msk.f32.mxu0 %vm5342_vm1, %v3613_v30  ;;  %v3713_v60 = vsel %vm273_vm2, %v300_v48, %v302_v53  ;;  %v307_v61 = vrot.slane %v3698_v57, 1  ;;  %v309_v63 = vrot.slane %v3701_v58, 1  ;;  %v310_v0 = vrot.slane %v3704_v59, 1  ;;  %v3724_v1 = vld [vmem:[%s3526_s25 + $0xb8] sm:$0x3]  ;;  %v3730_v3 = vld [vmem:[%s3526_s25 + $0xc8] sm:$0xff] }
  0x1c   : > { %3211 = vmatprep.mubr.msk.f32.mxu1 %vm5342_vm1, %v3584_v24  ;;  %v3719_v62 = vsel %vm273_vm2, %v304_v55, %v305_v56  ;;  %5360 = vst [vmem:[#allocation10_spill] sm:$0xff] %v3724_v1  ;;  %v312_v8 = vrot.slane %v3724_v1, 1  ;;  %v314_v13 = vrot.slane %v3727_v2, 1  ;;  %v315_v16 = vrot.slane %v3730_v3, 1  ;;  %v3750_v17 = vld [vmem:[%s3526_s25 + $0xd0] sm:$0x3] }
  0x1d   : > { %v3739_v7 = vsel %vm273_vm2, %v305_v56, %v307_v61  ;;  %v3745_v12 = vsel %vm273_vm2, %v309_v63, %v310_v0  ;;  %5361 = vst [vmem:[#allocation11_spill] sm:$0xff] %v3750_v17  ;;  %v3753_v21 = vld [vmem:[%s3526_s25 + $0xd8] sm:$0xff]  ;;  %v3756_v22 = vld [vmem:[%s3526_s25 + $0xe0] sm:$0xff]  ;;  %v317_v31 = vrot.slane %v3750_v17, 1  ;;  %v3776_v40 = vld [vmem:[%s3526_s25 + $0xe8] sm:$0x3] }
  0x1e   : > { %3159 = vmatmul.mubr.msk.f32.gmra.mxu0 %vm5342_vm1, %v3635_v36  ;;  %v3765_v29 = vsel %vm273_vm2, %v310_v0, %v312_v8  ;;  %v3771_v32 = vsel %vm273_vm2, %v314_v13, %v315_v16  ;;  %v319_v37 = vrot.slane %v3753_v21, 1  ;;  %v320_v39 = vrot.slane %v3756_v22, 1  ;;  %5362 = vst [vmem:[#allocation12_spill] sm:$0xff] %v3776_v40  ;;  %v3779_v45 = vld [vmem:[%s3526_s25 + $0xf0] sm:$0xff]  ;;  %v3782_v47 = vld [vmem:[%s3526_s25 + $0xf8] sm:$0xff]  ;;  %v3805_v0 = vld [vmem:[%s3526_s25 + $0x108] sm:$0xff] }
  0x1f   : > { %3212 = vmatmul.mubr.msk.f32.gmra.mxu1 %vm5342_vm1, %v3587_v25  ;;  %3161 = vmatprep.mubr.msk.f32.mxu0 %vm5342_vm1, %v3641_v38  ;;  %v3791_v48 = vsel %vm273_vm2, %v315_v16, %v317_v31  ;;  %v322_v53 = vrot.slane %v3776_v40, 1  ;;  %v324_v56 = vrot.slane %v3779_v45, 1  ;;  %v325_v61 = vrot.slane %v3782_v47, 1  ;;  %v3802_v63 = vld [vmem:[%s3526_s25 + $0x100] sm:$0x3]  ;;  %v3808_v8 = vld [vmem:[%s3526_s25 + $0x110] sm:$0xff] }
  0x20   : > { %3214 = vmatprep.mubr.msk.f32.mxu1 %vm5342_vm1, %v3621_v34  ;;  %v3797_v55 = vsel %vm273_vm2, %v319_v37, %v320_v39  ;;  %5363 = vst [vmem:[#allocation13_spill] sm:$0xff] %v3802_v63  ;;  %5364 = vst [vmem:[#allocation14_spill] sm:$0xff] %v3808_v8  ;;  %v327_v16 = vrot.slane %v3802_v63, 1  ;;  %v329_v37 = vrot.slane %v3805_v0, 1  ;;  %v330_v40 = vrot.slane %v3808_v8, 1  ;;  %v3831_v1 = vld [vmem:[%s3526_s25 + $0x120] sm:$0xff] }
  0x21   : > { %v3817_v13 = vsel %vm273_vm2, %v320_v39, %v322_v53  ;;  %v3823_v31 = vsel %vm273_vm2, %v324_v56, %v325_v61  ;;  %v3828_v17 = vld [vmem:[%s3526_s25 + $0x118] sm:$0x3]  ;;  %5366 = vst [vmem:[#allocation16_spill] sm:$0xff] %v3831_v1  ;;  %v3834_v39 = vld [vmem:[%s3526_s25 + $0x128] sm:$0xff]  ;;  %v334_v57 = vrot.slane %v3831_v1, 1 }
  0x22   : > { %3162 = vmatmul.mubr.msk.f32.gmra.mxu0 %vm5342_vm1, %v3661_v44  ;;  %5365 = vst [vmem:[#allocation15_spill] sm:$0xff] %v3828_v17  ;;  %5367 = vst [vmem:[#allocation17_spill] sm:$0xff] %v3834_v39  ;;  %v3843_v53 = vsel %vm273_vm2, %v325_v61, %v327_v16  ;;  %v332_v56 = vrot.slane %v3828_v17, 1  ;;  %v3849_v63 = vsel %vm273_vm2, %v329_v37, %v330_v40  ;;  %v335_v49 = vrot.slane %v3834_v39, 1  ;;  %v3854_v41 = vld [vmem:[%s3526_s25 + $0x130] sm:$0x3] }
  0x23   : > { %3215 = vmatmul.mubr.msk.f32.gmra.mxu1 %vm5342_vm1, %v3624_v35  ;;  %3164 = vmatprep.mubr.msk.f32.mxu0 %vm5342_vm1, %v3667_v46  ;;  %5368 = vst [vmem:[#allocation18_spill] sm:$0xff] %v3849_v63  ;;  %5369 = vst [vmem:[#allocation19_spill] sm:$0xff] %v3854_v41  ;;  %v3857_v33 = vld [vmem:[%s3526_s25 + $0x138] sm:$0xff]  ;;  %v3860_v61 = vld [vmem:[%s3526_s25 + $0x140] sm:$0xff]  ;;  %v337_v37 = vrot.slane %v3854_v41, 1 }
  0x24   : > { %3217 = vmatprep.mubr.msk.f32.mxu1 %vm5342_vm1, %v3649_v42  ;;  %5370 = vst [vmem:[#allocation20_spill] sm:$0xff] %v3857_v33  ;;  %v3869_v16 = vsel %vm273_vm2, %v330_v40, %v332_v56  ;;  %v3875_v17 = vsel %vm273_vm2, %v334_v57, %v335_v49  ;;  %v339_v23 = vrot.slane %v3857_v33, 1  ;;  %v340_v14 = vrot.slane %v3860_v61, 1  ;;  %v3880_v6 = vld [vmem:[%s3526_s25 + $0x148] sm:$0x3]  ;;  %v3886_v40 = vld [vmem:[%s3526_s25 + $0x158] sm:$0xff] }
  0x25   : > { %5371 = vst [vmem:[#allocation21_spill] sm:$0xff] %v3869_v16  ;;  %5372 = vst [vmem:[#allocation22_spill] sm:$0xff] %v3875_v17  ;;  %v3895_v57 = vsel %vm273_vm2, %v335_v49, %v337_v37  ;;  %v342_v56 = vrot.slane %v3880_v6, 1 }
  0x26   : > { %3165 = vmatmul.mubr.msk.f32.gmra.mxu0 %vm5342_vm1, %v3687_v52  ;;  %5373 = vst [vmem:[#allocation23_spill] sm:$0xff] %v3880_v6  ;;  %5374 = vst [vmem:[#allocation24_spill] sm:$0xff] %v3895_v57  ;;  %v3901_v41 = vsel %vm273_vm2, %v339_v23, %v340_v14 }
  0x27   : > { %3218 = vmatmul.mubr.msk.f32.gmra.mxu1 %vm5342_vm1, %v3652_v43  ;;  %3167 = vmatprep.mubr.msk.f32.mxu0 %vm5342_vm1, %v3693_v54  ;;  %v3921_v23 = vsel %vm273_vm2, %v340_v14, %v342_v56 }
  0x28   : > { %3220 = vmatprep.mubr.msk.f32.mxu1 %vm5342_vm1, %v3675_v50 }
  0x2a   : > { %3168 = vmatmul.mubr.msk.f32.gmra.mxu0 %vm5342_vm1, %v3713_v60 }
  0x2b   : > { %3221 = vmatmul.mubr.msk.f32.gmra.mxu1 %vm5342_vm1, %v3678_v51  ;;  %3170 = vmatprep.mubr.msk.f32.mxu0 %vm5342_vm1, %v3719_v62 }
  0x2c   : > { %3223 = vmatprep.mubr.msk.f32.mxu1 %vm5342_vm1, %v3701_v58 }
  0x2e   : > { %3171 = vmatmul.mubr.msk.f32.gmra.mxu0 %vm5342_vm1, %v3739_v7 }
  0x2f   : > { %3224 = vmatmul.mubr.msk.f32.gmra.mxu1 %vm5342_vm1, %v3704_v59  ;;  %3173 = vmatprep.mubr.msk.f32.mxu0 %vm5342_vm1, %v3745_v12 }
  0x30   : > { %3226 = vmatprep.mubr.msk.f32.mxu1 %vm5342_vm1, %v3727_v2 }
  0x32   : > { %3174 = vmatmul.mubr.msk.f32.gmra.mxu0 %vm5342_vm1, %v3765_v29 }
  0x33   : > { %3227 = vmatmul.mubr.msk.f32.gmra.mxu1 %vm5342_vm1, %v3730_v3  ;;  %3176 = vmatprep.mubr.msk.f32.mxu0 %vm5342_vm1, %v3771_v32 }
  0x34   : > { %3229 = vmatprep.mubr.msk.f32.mxu1 %vm5342_vm1, %v3753_v21 }
  0x36   : > { %3177 = vmatmul.mubr.msk.f32.gmra.mxu0 %vm5342_vm1, %v3791_v48 }
  0x37   : > { %3230 = vmatmul.mubr.msk.f32.gmra.mxu1 %vm5342_vm1, %v3756_v22  ;;  %3179 = vmatprep.mubr.msk.f32.mxu0 %vm5342_vm1, %v3797_v55 }
  0x38   : > { %3232 = vmatprep.mubr.msk.f32.mxu1 %vm5342_vm1, %v3779_v45 }
  0x3a   : > { %3180 = vmatmul.mubr.msk.f32.gmra.mxu0 %vm5342_vm1, %v3817_v13 }
  0x3b   : > { %3233 = vmatmul.mubr.msk.f32.gmra.mxu1 %vm5342_vm1, %v3782_v47  ;;  %3182 = vmatprep.mubr.msk.f32.mxu0 %vm5342_vm1, %v3823_v31 }
  0x3c   : > { %3235 = vmatprep.mubr.msk.f32.mxu1 %vm5342_vm1, %v3805_v0 }
  0x3e   : > { %3183 = vmatmul.mubr.msk.f32.gmra.mxu0 %vm5342_vm1, %v3843_v53 }
  0x3f   : > { %3236 = vmatmul.mubr.msk.f32.gmra.mxu1 %vm5342_vm1, %v3808_v8  ;;  %3185 = vmatprep.mubr.msk.f32.mxu0 %vm5342_vm1, %v3849_v63  ;;  %v3883_v63 = vld [vmem:[%s3526_s25 + $0x150] sm:$0xff]  ;;  %v3909_v8 = vld [vmem:[%s3526_s25 + $0x168] sm:$0xff] }
  0x40   : > { %3238 = vmatprep.mubr.msk.f32.mxu1 %vm5342_vm1, %v3831_v1  ;;  %v345_v1 = vrot.slane %v3886_v40, 1  ;;  %v349_v6 = vrot.slane %v3909_v8, 1 }
  0x42   : > { %3186 = vmatmul.mubr.msk.f32.gmra.mxu0 %vm5342_vm1, %v3869_v16  ;;  %v344_v16 = vrot.slane %v3883_v63, 1 }
  0x43   : > { %3239 = vmatmul.mubr.msk.f32.gmra.mxu1 %vm5342_vm1, %v3834_v39  ;;  %3188 = vmatprep.mubr.msk.f32.mxu0 %vm5342_vm1, %v3875_v17  ;;  %v3906_v39 = vld [vmem:[%s3526_s25 + $0x160] sm:$0x3]  ;;  %v3912_v17 = vld [vmem:[%s3526_s25 + $0x170] sm:$0xff] }
  0x44   : > { %3241 = vmatprep.mubr.msk.f32.mxu1 %vm5342_vm1, %v3857_v33  ;;  %v347_v49 = vrot.slane %v3906_v39, 1  ;;  %v3927_v37 = vsel %vm273_vm2, %v344_v16, %v345_v1  ;;  %v3932_v33 = vld [vmem:[%s3526_s25 + $0x178] sm:$0x3] }
  0x45   : > { %v352_v16 = vrot.slane %v3932_v33, 1 }
  0x46   : > { %3189 = vmatmul.mubr.msk.f32.gmra.mxu0 %vm5342_vm1, %v3895_v57  ;;  %v350_v57 = vrot.slane %v3912_v17, 1  ;;  %v3941_v14 = vsel %vm273_vm2, %v345_v1, %v347_v49  ;;  %v1422_v49 = vrot.slane %v3649_v42, 2 }
  0x47   : > { %3242 = vmatmul.mubr.msk.f32.gmra.mxu1 %vm5342_vm1, %v3860_v61  ;;  %3191 = vmatprep.mubr.msk.f32.mxu0 %vm5342_vm1, %v3901_v41 }
  0x48   : > { %3244 = vmatprep.mubr.msk.f32.mxu1 %vm5342_vm1, %v3883_v63  ;;  %v3947_v56 = vsel %vm273_vm2, %v349_v6, %v350_v57  ;;  %v3956_v1 = vsel %vm273_vm2, %v350_v57, %v352_v16  ;;  %v5375_v6 = vld [vmem:[#allocation14_spill] sm:$0xff]  ;;  %v5387_v57 = vld [vmem:[#allocation7_spill] sm:$0xff] }
  0x4a   : > { %3192 = vmatmul.mubr.msk.f32.gmra.mxu0 %vm5342_vm1, %v3921_v23 }
  0x4b   : > { %3245 = vmatmul.mubr.msk.f32.gmra.mxu1 %vm5342_vm1, %v3886_v40  ;;  %3194 = vmatprep.mubr.msk.f32.mxu0 %vm5342_vm1, %v3927_v37 }
  0x4c   : > { %3247 = vmatprep.mubr.msk.f32.mxu1 %vm5342_vm1, %v3909_v8 }
  0x4e   : > { %3195 = vmatmul.mubr.msk.f32.gmra.mxu0 %vm5342_vm1, %v3941_v14 }
  0x4f   : > { %3248 = vmatmul.mubr.msk.f32.gmra.mxu1 %vm5342_vm1, %v3912_v17  ;;  %3197 = vmatprep.mubr.msk.f32.mxu0 %vm5342_vm1, %v3947_v56 }
  0x50   : > { %3302 = vmatprep.mubr.msk.f32.mxu1 %vm5342_vm1, %v3529_v4 }
  0x52   : > { %3198 = vmatmul.mubr.msk.f32.gmra.mxu0 %vm5342_vm1, %v3956_v1 }
  0x53   : > { %3303 = vmatmul.mubr.msk.f32.vlgmr.msra.gmra.mxu1 %vm5342_vm1, %v3532_v5  ;;  %3252 = vmatprep.mubr.msk.f32.mxu0 %vm5342_vm1, %v3560_v15  ;;  %v5377_v15 = vld [vmem:[#allocation16_spill] sm:$0xff] }
  0x54   : > { %3305 = vmatprep.mubr.msk.f32.mxu1 %vm5342_vm1, %v3542_v9  ;;  %3401 = vmatpush3.msk.msra.mxu1 %vm419_vm0, %v3550_v11  ;;  %v5376_v11 = vld [vmem:[#allocation18_spill] sm:$0xff] }
  0x56   : > { %3253 = vmatmul.mubr.msk.f32.vlgmr.msra.gmra.mxu0 %vm5342_vm1, %v3576_v20  ;;  %v5378_v20 = vld [vmem:[#allocation21_spill] sm:$0xff] }
  0x57   : > { %3351 = vmatpush3.msk.msra.mxu0 %vm419_vm0, %v3599_v27  ;;  %3306 = vmatmul.mubr.msk.f32.gmra.mxu1 %vm5342_vm1, %v3545_v10  ;;  %v5380_v27 = vld [vmem:[#allocation22_spill] sm:$0xff] }
  0x58   : > { %3255 = vmatprep.mubr.msk.f32.mxu0 %vm5342_vm1, %v3594_v26  ;;  %3308 = vmatprep.mubr.msk.f32.mxu1 %vm5342_vm1, %v3567_v18  ;;  %v5379_v26 = vld [vmem:[#allocation17_spill] sm:$0xff] }
  0x5a   : > { %3256 = vmatmul.mubr.msk.f32.gmra.mxu0 %vm5342_vm1, %v3605_v28  ;;  %v5381_v28 = vld [vmem:[#allocation20_spill] sm:$0xff] }
  0x5b   : > { %3309 = vmatmul.mubr.msk.f32.gmra.mxu1 %vm5342_vm1, %v3570_v19  ;;  %3258 = vmatprep.mubr.msk.f32.mxu0 %vm5342_vm1, %v3613_v30  ;;  %v5382_v30 = vld [vmem:[#allocation24_spill] sm:$0xff] }
  0x5c   : > { %3311 = vmatprep.mubr.msk.f32.mxu1 %vm5342_vm1, %v3584_v24 }
  0x5e   : > { %3259 = vmatmul.mubr.msk.f32.gmra.mxu0 %vm5342_vm1, %v3635_v36  ;;  %v1397_v36 = vrot.slane %v3529_v4, 2  ;;  %v1403_v4 = vrot.slane %v3545_v10, 2  ;;  %v1408_v10 = vrot.slane %v3570_v19, 2 }
  0x5f   : > { %3312 = vmatmul.mubr.msk.f32.gmra.mxu1 %vm5342_vm1, %v3587_v25  ;;  %3261 = vmatprep.mubr.msk.f32.mxu0 %vm5342_vm1, %v3641_v38  ;;  %v1398_v38 = vrot.slane %v3532_v5, 2 }
  0x60   : > { %3314 = vmatprep.mubr.msk.f32.mxu1 %vm5342_vm1, %v3621_v34 }
  0x61   : > { %v1399_v5 = vsel %vm1396_vm3, %v1397_v36, %v1398_v38  ;;  %v5390_v36 = vld [vmem:[#allocation10_spill] sm:$0xff] }
  0x62   : > { %3262 = vmatmul.mubr.msk.f32.gmra.mxu0 %vm5342_vm1, %v3661_v44  ;;  %v5383_v44 = vld [vmem:[#allocation3_spill] sm:$0xff] }
  0x63   : > { %3315 = vmatmul.mubr.msk.f32.gmra.mxu1 %vm5342_vm1, %v3624_v35  ;;  %3264 = vmatprep.mubr.msk.f32.mxu0 %vm5342_vm1, %v3667_v46  ;;  %v1400_v46 = vrot.slane %v5383_v44, 2  ;;  %v1437_v44 = vrot.slane %v3727_v2, 2 }
  0x64   : > { %3317 = vmatprep.mubr.msk.f32.mxu1 %vm5342_vm1, %v3649_v42  ;;  %v1428_v42 = vrot.slane %v3678_v51, 2 }
  0x66   : > { %3265 = vmatmul.mubr.msk.f32.gmra.mxu0 %vm5342_vm1, %v3687_v52  ;;  %v1401_v52 = vsel %vm1396_vm3, %v1398_v38, %v1400_v46  ;;  %v1435_v38 = vrot.slane %v5390_v36, 2 }
  0x67   : > { %3318 = vmatmul.mubr.msk.f32.gmra.mxu1 %vm5342_vm1, %v3652_v43  ;;  %3267 = vmatprep.mubr.msk.f32.mxu0 %vm5342_vm1, %v3693_v54  ;;  %v5384_v54 = vld [vmem:[#allocation4_spill] sm:$0xff] }
  0x68   : > { %3320 = vmatprep.mubr.msk.f32.mxu1 %vm5342_vm1, %v3675_v50 }
  0x6a   : > { %3268 = vmatmul.mubr.msk.f32.gmra.mxu0 %vm5342_vm1, %v3713_v60  ;;  %v1405_v60 = vrot.slane %v5384_v54, 2  ;;  %v5392_v54 = vld [vmem:[#allocation12_spill] sm:$0xff] }
  0x6b   : > { %3321 = vmatmul.mubr.msk.f32.gmra.mxu1 %vm5342_vm1, %v3678_v51  ;;  %3270 = vmatprep.mubr.msk.f32.mxu0 %vm5342_vm1, %v3719_v62 }
  0x6c   : > { %3323 = vmatprep.mubr.msk.f32.mxu1 %vm5342_vm1, %v3701_v58 }
  0x6e   : > { %3271 = vmatmul.mubr.msk.f32.gmra.mxu0 %vm5342_vm1, %v3739_v7  ;;  %v1406_v7 = vsel %vm1396_vm3, %v1403_v4, %v1405_v60  ;;  %v1445_v60 = vrot.slane %v5392_v54, 2 }
  0x6f   : > { %3324 = vmatmul.mubr.msk.f32.gmra.mxu1 %vm5342_vm1, %v3704_v59  ;;  %3273 = vmatprep.mubr.msk.f32.mxu0 %vm5342_vm1, %v3745_v12  ;;  %v5385_v12 = vld [vmem:[#allocation5_spill] sm:$0xff] }
  0x70   : > { %3326 = vmatprep.mubr.msk.f32.mxu1 %vm5342_vm1, %v3727_v2  ;;  %v1443_v2 = vrot.slane %v3756_v22, 2 }
  0x72   : > { %3274 = vmatmul.mubr.msk.f32.gmra.mxu0 %vm5342_vm1, %v3765_v29  ;;  %v1410_v29 = vrot.slane %v5385_v12, 2  ;;  %v1452_v12 = vrot.slane %v3805_v0, 2 }
  0x73   : > { %3327 = vmatmul.mubr.msk.f32.gmra.mxu1 %vm5342_vm1, %v3730_v3  ;;  %3276 = vmatprep.mubr.msk.f32.mxu0 %vm5342_vm1, %v3771_v32  ;;  %v1412_v32 = vrot.slane %v3584_v24, 2  ;;  %v1418_v24 = vrot.slane %v3624_v35, 2 }
  0x74   : > { %3329 = vmatprep.mubr.msk.f32.mxu1 %vm5342_vm1, %v3753_v21 }
  0x76   : > { %3277 = vmatmul.mubr.msk.f32.gmra.mxu0 %vm5342_vm1, %v3791_v48  ;;  %v1411_v48 = vsel %vm1396_vm3, %v1408_v10, %v1410_v29 }
  0x77   : > { %3330 = vmatmul.mubr.msk.f32.gmra.mxu1 %vm5342_vm1, %v3756_v22  ;;  %3279 = vmatprep.mubr.msk.f32.mxu0 %vm5342_vm1, %v3797_v55  ;;  %v5386_v55 = vld [vmem:[#allocation6_spill] sm:$0xff] }
  0x78   : > { %3332 = vmatprep.mubr.msk.f32.mxu1 %vm5342_vm1, %v3779_v45 }
  0x7a   : > { %3280 = vmatmul.mubr.msk.f32.gmra.mxu0 %vm5342_vm1, %v3817_v13  ;;  %v1415_v13 = vrot.slane %v5386_v55, 2  ;;  %v5395_v55 = vld [vmem:[#allocation19_spill] sm:$0xff] }
  0x7b   : > { %3333 = vmatmul.mubr.msk.f32.gmra.mxu1 %vm5342_vm1, %v3782_v47  ;;  %3282 = vmatprep.mubr.msk.f32.mxu0 %vm5342_vm1, %v3823_v31  ;;  %v1417_v31 = vrot.slane %v3621_v34, 2  ;;  %v1423_v34 = vrot.slane %v3652_v43, 2 }
  0x7c   : > { %3335 = vmatprep.mubr.msk.f32.mxu1 %vm5342_vm1, %v3805_v0  ;;  %v1458_v0 = vrot.slane %v5379_v26, 2 }
  0x7d   : > { %v1419_v35 = vsel %vm1396_vm3, %v1417_v31, %v1418_v24  ;;  %v1424_v43 = vsel %vm1396_vm3, %v1422_v49, %v1423_v34  ;;  %v1462_v31 = vrot.slane %v5381_v28, 2  ;;  %v1470_v49 = vrot.slane %v3906_v39, 2 }
  0x7e   : > { %3283 = vmatmul.mubr.msk.f32.gmra.mxu0 %vm5342_vm1, %v3843_v53  ;;  %v1475_v39 = vrot.slane %v3932_v33, 2 }
  0x7f   : > { %3336 = vmatmul.mubr.msk.f32.gmra.mxu1 %vm5342_vm1, %v5375_v6  ;;  %3285 = vmatprep.mubr.msk.f32.mxu0 %vm5342_vm1, %v5376_v11  ;;  %v5389_v11 = vld [vmem:[#allocation9_spill] sm:$0xff] }
  0x80   : > { %3338 = vmatprep.mubr.msk.f32.mxu1 %vm5342_vm1, %v5377_v15 }
  0x82   : > { %3286 = vmatmul.mubr.msk.f32.gmra.mxu0 %vm5342_vm1, %v5378_v20  ;;  %v1430_v20 = vrot.slane %v5389_v11, 2 }
  0x83   : > { %3339 = vmatmul.mubr.msk.f32.gmra.mxu1 %vm5342_vm1, %v5379_v26  ;;  %3288 = vmatprep.mubr.msk.f32.mxu0 %vm5342_vm1, %v5380_v27  ;;  %v1432_v27 = vrot.slane %v3701_v58, 2  ;;  %v1438_v58 = vrot.slane %v3730_v3, 2 }
  0x84   : > { %3341 = vmatprep.mubr.msk.f32.mxu1 %vm5342_vm1, %v5381_v28  ;;  %v1468_v28 = vrot.slane %v3886_v40, 2 }
  0x85   : > { %v1439_v3 = vsel %vm1396_vm3, %v1437_v44, %v1438_v58 }
  0x86   : > { %3289 = vmatmul.mubr.msk.f32.gmra.mxu0 %vm5342_vm1, %v5382_v30  ;;  %v1431_v30 = vsel %vm1396_vm3, %v1428_v42, %v1430_v20 }
  0x87   : > { %3342 = vmatmul.mubr.msk.f32.gmra.mxu1 %vm5342_vm1, %v3860_v61  ;;  %3291 = vmatprep.mubr.msk.f32.mxu0 %vm5342_vm1, %v3901_v41  ;;  %v1402_v41 = vrot.slane %v3542_v9, 2  ;;  %v1407_v9 = vrot.slane %v3567_v18, 2  ;;  %v1413_v18 = vrot.slane %v3587_v25, 2 }
  0x88   : > { %3344 = vmatprep.mubr.msk.f32.mxu1 %vm5342_vm1, %v3883_v63 }
  0x89   : > { %v1404_v62 = vsel %vm1396_vm3, %v1402_v41, %v1403_v4  ;;  %v1409_v19 = vsel %vm1396_vm3, %v1407_v9, %v1408_v10  ;;  %v1414_v25 = vsel %vm1396_vm3, %v1412_v32, %v1413_v18  ;;  %v1416_v53 = vsel %vm1396_vm3, %v1413_v18, %v1415_v13  ;;  %v5391_v41 = vld [vmem:[#allocation11_spill] sm:$0xff] }
  0x8a   : > { %3292 = vmatmul.mubr.msk.f32.gmra.mxu0 %vm5342_vm1, %v3921_v23  ;;  %v1420_v23 = vrot.slane %v5387_v57, 2  ;;  %v1440_v4 = vrot.slane %v5391_v41, 2  ;;  %v1447_v9 = vrot.slane %v3779_v45, 2  ;;  %v1446_v10 = vsel %vm1396_vm3, %v1443_v2, %v1445_v60  ;;  %v5394_v32 = vld [vmem:[#allocation15_spill] sm:$0xff] }
  0x8b   : > { %3345 = vmatmul.mubr.msk.f32.gmra.mxu1 %vm5342_vm1, %v3886_v40  ;;  %3294 = vmatprep.mubr.msk.f32.mxu0 %vm5342_vm1, %v3927_v37  ;;  %v1453_v45 = vrot.slane %v5375_v6, 2  ;;  %v1455_v18 = vrot.slane %v5394_v32, 2  ;;  %v1460_v13 = vrot.slane %v5395_v55, 2  ;;  %v1467_v57 = vrot.slane %v3883_v63, 2 }
  0x8c   : > { %3347 = vmatprep.mubr.msk.f32.mxu1 %vm5342_vm1, %v3909_v8  ;;  %v1421_v37 = vsel %vm1396_vm3, %v1418_v24, %v1420_v23  ;;  %v1472_v63 = vrot.slane %v3909_v8, 2  ;;  %v1473_v40 = vrot.slane %v3912_v17, 2 }
  0x8d   : > { %v1454_v6 = vsel %vm1396_vm3, %v1452_v12, %v1453_v45  ;;  %v1461_v24 = vsel %vm1396_vm3, %v1458_v0, %v1460_v13 }
  0x8e   : > { %3295 = vmatmul.mubr.msk.f32.gmra.mxu0 %vm5342_vm1, %v3941_v14  ;;  %v5388_v14 = vld [vmem:[#allocation8_spill] sm:$0xff]  ;;  %v1474_v8 = vsel %vm1396_vm3, %v1472_v63, %v1473_v40 }
  0x8f   : > { %3348 = vmatmul.mubr.msk.f32.gmra.mxu1 %vm5342_vm1, %v3912_v17  ;;  %3297 = vmatprep.mubr.msk.f32.mxu0 %vm5342_vm1, %v3947_v56  ;;  %v1425_v16 = vrot.slane %v5388_v14, 2  ;;  %v1427_v56 = vrot.slane %v3675_v50, 2  ;;  %v1433_v50 = vrot.slane %v3704_v59, 2  ;;  %v1476_v17 = vsel %vm1396_vm3, %v1473_v40, %v1475_v39 }
  0x90   : > { %3402 = vmatprep.mubr.msk.f32.mxu1 %vm5342_vm1, %v1399_v5 }
  0x91   : > { %v1429_v51 = vsel %vm1396_vm3, %v1427_v56, %v1428_v42  ;;  %v1434_v59 = vsel %vm1396_vm3, %v1432_v27, %v1433_v50  ;;  %v1436_v46 = vsel %vm1396_vm3, %v1433_v50, %v1435_v38 }
  0x92   : > { %3298 = vmatmul.mubr.msk.f32.gmra.mxu0 %vm5342_vm1, %v3956_v1  ;;  %v1426_v1 = vsel %vm1396_vm3, %v1423_v34, %v1425_v16  ;;  %v1469_v34 = vsel %vm1396_vm3, %v1467_v57, %v1468_v28 }
  0x93   : > { %3403 = vmatmul.mubr.msk.f32.vlgmr.msra.gmra.mxu1 %vm5342_vm1, %v1401_v52  ;;  %3352 = vmatprep.mubr.msk.f32.mxu0 %vm5342_vm1, %v1399_v5  ;;  %v1442_v5 = vrot.slane %v3753_v21, 2  ;;  %v1448_v21 = vrot.slane %v3782_v47, 2 }
  0x94   : > { %3405 = vmatprep.mubr.msk.f32.mxu1 %vm5342_vm1, %v1404_v62 }
  0x95   : > { %v1444_v22 = vsel %vm1396_vm3, %v1442_v5, %v1443_v2  ;;  %v1449_v47 = vsel %vm1396_vm3, %v1447_v9, %v1448_v21 }
  0x96   : > { %3353 = vmatmul.mubr.msk.f32.vlgmr.msra.gmra.mxu0 %vm5342_vm1, %v1401_v52  ;;  %v1441_v52 = vsel %vm1396_vm3, %v1438_v58, %v1440_v4 }
  0x97   : > { %3406 = vmatmul.mubr.msk.f32.gmra.mxu1 %vm5342_vm1, %v1406_v7  ;;  %3355 = vmatprep.mubr.msk.f32.mxu0 %vm5342_vm1, %v1404_v62  ;;  %v5393_v62 = vld [vmem:[#allocation13_spill] sm:$0xff] }
  0x98   : > { %3408 = vmatprep.mubr.msk.f32.mxu1 %vm5342_vm1, %v1409_v19 }
  0x9a   : > { %3356 = vmatmul.mubr.msk.f32.gmra.mxu0 %vm5342_vm1, %v1406_v7  ;;  %v1450_v7 = vrot.slane %v5393_v62, 2 }
  0x9b   : > { %3409 = vmatmul.mubr.msk.f32.gmra.mxu1 %vm5342_vm1, %v1411_v48  ;;  %3358 = vmatprep.mubr.msk.f32.mxu0 %vm5342_vm1, %v1409_v19  ;;  %v1457_v19 = vrot.slane %v5377_v15, 2  ;;  %v1463_v15 = vrot.slane %v3860_v61, 2 }
  0x9c   : > { %3411 = vmatprep.mubr.msk.f32.mxu1 %vm5342_vm1, %v1414_v25  ;;  %v1451_v29 = vsel %vm1396_vm3, %v1448_v21, %v1450_v7 }
  0x9d   : > { %v1459_v26 = vsel %vm1396_vm3, %v1457_v19, %v1458_v0  ;;  %v1464_v61 = vsel %vm1396_vm3, %v1462_v31, %v1463_v15 }
  0x9e   : > { %3359 = vmatmul.mubr.msk.f32.gmra.mxu0 %vm5342_vm1, %v1411_v48  ;;  %v1456_v48 = vsel %vm1396_vm3, %v1453_v45, %v1455_v18 }
  0x9f   : > { %3412 = vmatmul.mubr.msk.f32.gmra.mxu1 %vm5342_vm1, %v1416_v53  ;;  %3361 = vmatprep.mubr.msk.f32.mxu0 %vm5342_vm1, %v1414_v25  ;;  %v5396_v25 = vld [vmem:[#allocation23_spill] sm:$0xff] }
  0xa0   : > { %3414 = vmatprep.mubr.msk.f32.mxu1 %vm5342_vm1, %v1419_v35 }
  0xa2   : > { %3362 = vmatmul.mubr.msk.f32.gmra.mxu0 %vm5342_vm1, %v1416_v53  ;;  %v1465_v53 = vrot.slane %v5396_v25, 2 }
  0xa3   : > { %3415 = vmatmul.mubr.msk.f32.gmra.mxu1 %vm5342_vm1, %v1421_v37  ;;  %3364 = vmatprep.mubr.msk.f32.mxu0 %vm5342_vm1, %v1419_v35  ;;  %v1471_v35 = vsel %vm1396_vm3, %v1468_v28, %v1470_v49 }
  0xa4   : > { %3417 = vmatprep.mubr.msk.f32.mxu1 %vm5342_vm1, %v1424_v43  ;;  %v1466_v23 = vsel %vm1396_vm3, %v1463_v15, %v1465_v53 }
  0xa6   : > { %3365 = vmatmul.mubr.msk.f32.gmra.mxu0 %vm5342_vm1, %v1421_v37 }
  0xa7   : > { %3418 = vmatmul.mubr.msk.f32.gmra.mxu1 %vm5342_vm1, %v1426_v1  ;;  %3367 = vmatprep.mubr.msk.f32.mxu0 %vm5342_vm1, %v1424_v43 }
  0xa8   : > { %3420 = vmatprep.mubr.msk.f32.mxu1 %vm5342_vm1, %v1429_v51 }
  0xaa   : > { %3368 = vmatmul.mubr.msk.f32.gmra.mxu0 %vm5342_vm1, %v1426_v1 }
  0xab   : > { %3421 = vmatmul.mubr.msk.f32.gmra.mxu1 %vm5342_vm1, %v1431_v30  ;;  %3370 = vmatprep.mubr.msk.f32.mxu0 %vm5342_vm1, %v1429_v51 }
  0xac   : > { %3423 = vmatprep.mubr.msk.f32.mxu1 %vm5342_vm1, %v1434_v59 }
  0xae   : > { %3371 = vmatmul.mubr.msk.f32.gmra.mxu0 %vm5342_vm1, %v1431_v30 }
  0xaf   : > { %3424 = vmatmul.mubr.msk.f32.gmra.mxu1 %vm5342_vm1, %v1436_v46  ;;  %3373 = vmatprep.mubr.msk.f32.mxu0 %vm5342_vm1, %v1434_v59 }
  0xb0   : > { %3426 = vmatprep.mubr.msk.f32.mxu1 %vm5342_vm1, %v1439_v3 }
  0xb2   : > { %3374 = vmatmul.mubr.msk.f32.gmra.mxu0 %vm5342_vm1, %v1436_v46 }
  0xb3   : > { %3427 = vmatmul.mubr.msk.f32.gmra.mxu1 %vm5342_vm1, %v1441_v52  ;;  %3376 = vmatprep.mubr.msk.f32.mxu0 %vm5342_vm1, %v1439_v3 }
  0xb4   : > { %3429 = vmatprep.mubr.msk.f32.mxu1 %vm5342_vm1, %v1444_v22 }
  0xb6   : > { %3377 = vmatmul.mubr.msk.f32.gmra.mxu0 %vm5342_vm1, %v1441_v52 }
  0xb7   : > { %3430 = vmatmul.mubr.msk.f32.gmra.mxu1 %vm5342_vm1, %v1446_v10  ;;  %3379 = vmatprep.mubr.msk.f32.mxu0 %vm5342_vm1, %v1444_v22 }
  0xb8   : > { %3432 = vmatprep.mubr.msk.f32.mxu1 %vm5342_vm1, %v1449_v47 }
  0xba   : > { %3380 = vmatmul.mubr.msk.f32.gmra.mxu0 %vm5342_vm1, %v1446_v10 }
  0xbb   : > { %3433 = vmatmul.mubr.msk.f32.gmra.mxu1 %vm5342_vm1, %v1451_v29  ;;  %3382 = vmatprep.mubr.msk.f32.mxu0 %vm5342_vm1, %v1449_v47 }
  0xbc   : > { %3435 = vmatprep.mubr.msk.f32.mxu1 %vm5342_vm1, %v1454_v6 }
  0xbe   : > { %3383 = vmatmul.mubr.msk.f32.gmra.mxu0 %vm5342_vm1, %v1451_v29 }
  0xbf   : > { %3436 = vmatmul.mubr.msk.f32.gmra.mxu1 %vm5342_vm1, %v1456_v48  ;;  %3385 = vmatprep.mubr.msk.f32.mxu0 %vm5342_vm1, %v1454_v6 }
  0xc0   : > { %3438 = vmatprep.mubr.msk.f32.mxu1 %vm5342_vm1, %v1459_v26 }
  0xc2   : > { %3386 = vmatmul.mubr.msk.f32.gmra.mxu0 %vm5342_vm1, %v1456_v48 }
  0xc3   : > { %3439 = vmatmul.mubr.msk.f32.gmra.mxu1 %vm5342_vm1, %v1461_v24  ;;  %3388 = vmatprep.mubr.msk.f32.mxu0 %vm5342_vm1, %v1459_v26 }
  0xc4   : > { %3441 = vmatprep.mubr.msk.f32.mxu1 %vm5342_vm1, %v1464_v61 }
  0xc6   : > { %3389 = vmatmul.mubr.msk.f32.gmra.mxu0 %vm5342_vm1, %v1461_v24 }
  0xc7   : > { %3442 = vmatmul.mubr.msk.f32.gmra.mxu1 %vm5342_vm1, %v1466_v23  ;;  %3391 = vmatprep.mubr.msk.f32.mxu0 %vm5342_vm1, %v1464_v61 }
  0xc8   : > { %3444 = vmatprep.mubr.msk.f32.mxu1 %vm5342_vm1, %v1469_v34 }
  0xca   : > { %3392 = vmatmul.mubr.msk.f32.gmra.mxu0 %vm5342_vm1, %v1466_v23 }
  0xcb   : > { %3445 = vmatmul.mubr.msk.f32.gmra.mxu1 %vm5342_vm1, %v1471_v35  ;;  %3394 = vmatprep.mubr.msk.f32.mxu0 %vm5342_vm1, %v1469_v34 }
  0xcc   : > { %3447 = vmatprep.mubr.msk.f32.mxu1 %vm5342_vm1, %v1474_v8 }
  0xce   : > { %3395 = vmatmul.mubr.msk.f32.gmra.mxu0 %vm5342_vm1, %v1471_v35 }
  0xcf   : > { %3397 = vmatprep.mubr.msk.f32.mxu0 %vm5342_vm1, %v1474_v8  ;;  %3448 = vmatmul.mubr.msk.f32.gmra.mxu1 %vm5342_vm1, %v1476_v17 }
  0xd2   : > { %3398 = vmatmul.mubr.msk.f32.gmra.mxu0 %vm5342_vm1, %v1476_v17 }
  0xd3   : > { %v3204_v37 = vpop.f32.mrf.mxu1 }
  0xd5   : > { %v781_v33 = vpop.f32.mrf.mxu1 }
  0xd6   : > { %v3154_v14 = vpop.f32.mrf.mxu0 }
  0xd7   : > { %v4236_v16 = vadd.f32 %v3204_v37, %v3154_v14  ;;  %v3207_v56 = vpop.f32.mrf.mxu1 }
  0xd8   : > { %v489_v42 = vpop.f32.mrf.mxu0 }
  0xd9   : > { %v4238_v43 = vadd.f32 %v781_v33, %v489_v42  ;;  %v791_v1 = vpop.f32.mrf.mxu1 }
  0xda   : > { %v3157_v11 = vpop.f32.mrf.mxu0 }
  0xdb   : > { %v4240_v20 = vadd.f32 %v3207_v56, %v3157_v11  ;;  %v3210_v27 = vpop.f32.mrf.mxu1 }
  0xdc   : > { %v499_v50 = vpop.f32.mrf.mxu0 }
  0xdd   : > { %v4242_v51 = vadd.f32 %v791_v1, %v499_v50  ;;  %v801_v30 = vpop.f32.mrf.mxu1 }
  0xde   : > { %v3160_v36 = vpop.f32.mrf.mxu0 }
  0xdf   : > { %v4244_v38 = vadd.f32 %v3210_v27, %v3160_v36  ;;  %v3213_v44 = vpop.f32.mrf.mxu1 }
  0xe0   : > { %v509_v58 = vpop.f32.mrf.mxu0 }
  0xe1   : > { %v4246_v59 = vadd.f32 %v801_v30, %v509_v58  ;;  %v811_v46 = vpop.f32.mrf.mxu1 }
  0xe2   : > { %v3163_v41 = vpop.f32.mrf.mxu0 }
  0xe3   : > { %v4248_v4 = vadd.f32 %v3213_v44, %v3163_v41  ;;  %v3216_v5 = vpop.f32.mrf.mxu1 }
  0xe4   : > { %v519_v2 = vpop.f32.mrf.mxu0 }
  0xe5   : > { %v4250_v3 = vadd.f32 %v811_v46, %v519_v2  ;;  %v821_v52 = vpop.f32.mrf.mxu1 }
  0xe6   : > { %v3166_v54 = vpop.f32.mrf.mxu0 }
  0xe7   : > { %v4252_v60 = vadd.f32 %v3216_v5, %v3166_v54  ;;  %v3219_v9 = vpop.f32.mrf.mxu1 }
  0xe8   : > { %v529_v21 = vpop.f32.mrf.mxu0 }
  0xe9   : > { %v4254_v22 = vadd.f32 %v821_v52, %v529_v21  ;;  %v831_v10 = vpop.f32.mrf.mxu1 }
  0xea   : > { %v3169_v62 = vpop.f32.mrf.mxu0 }
  0xeb   : > { %v4256_v7 = vadd.f32 %v3219_v9, %v3169_v62  ;;  %v3222_v12 = vpop.f32.mrf.mxu1 }
  0xec   : > { %v539_v45 = vpop.f32.mrf.mxu0 }
  0xed   : > { %v4258_v47 = vadd.f32 %v831_v10, %v539_v45  ;;  %v841_v29 = vpop.f32.mrf.mxu1 }
  0xee   : > { %v3172_v32 = vpop.f32.mrf.mxu0 }
  0xef   : > { %v4260_v18 = vadd.f32 %v3222_v12, %v3172_v32  ;;  %v3225_v19 = vpop.f32.mrf.mxu1 }
  0xf0   : > { %v549_v0 = vpop.f32.mrf.mxu0 }
  0xf1   : > { %v4262_v6 = vadd.f32 %v841_v29, %v549_v0  ;;  %v851_v48 = vpop.f32.mrf.mxu1 }
  0xf2   : > { %v3175_v55 = vpop.f32.mrf.mxu0 }
  0xf3   : > { %v4264_v13 = vadd.f32 %v3225_v19, %v3175_v55  ;;  %v3228_v31 = vpop.f32.mrf.mxu1 }
  0xf4   : > { %v559_v15 = vpop.f32.mrf.mxu0 }
  0xf5   : > { %v4266_v26 = vadd.f32 %v851_v48, %v559_v15  ;;  %v861_v24 = vpop.f32.mrf.mxu1 }
  0xf6   : > { %v3178_v25 = vpop.f32.mrf.mxu0 }
  0xf7   : > { %v4268_v53 = vadd.f32 %v3228_v31, %v3178_v25  ;;  %v3231_v57 = vpop.f32.mrf.mxu1 }
  0xf8   : > { %v569_v28 = vpop.f32.mrf.mxu0 }
  0xf9   : > { %v4270_v61 = vadd.f32 %v861_v24, %v569_v28  ;;  %v871_v23 = vpop.f32.mrf.mxu1 }
  0xfa   : > { %v3181_v49 = vpop.f32.mrf.mxu0 }
  0xfb   : > { %v4272_v34 = vadd.f32 %v3231_v57, %v3181_v49  ;;  %v3234_v63 = vpop.f32.mrf.mxu1 }
  0xfc   : > { %v579_v40 = vpop.f32.mrf.mxu0 }
  0xfd   : > { %v4274_v35 = vadd.f32 %v871_v23, %v579_v40  ;;  %v881_v39 = vpop.f32.mrf.mxu1 }
  0xfe   : > { %v3184_v8 = vpop.f32.mrf.mxu0 }
  0xff   : > { %v4276_v17 = vadd.f32 %v3234_v63, %v3184_v8  ;;  %v3237_v37 = vpop.f32.mrf.mxu1 }
 0x100   : > { %v589_v33 = vpop.f32.mrf.mxu0 }
 0x101   : > { %v4278_v14 = vadd.f32 %v881_v39, %v589_v33  ;;  %v891_v56 = vpop.f32.mrf.mxu1 }
 0x102   : > { %v3187_v42 = vpop.f32.mrf.mxu0 }
 0x103   : > { %v4280_v1 = vadd.f32 %v3237_v37, %v3187_v42  ;;  %v3240_v11 = vpop.f32.mrf.mxu1 }
 0x104   : > { %v599_v27 = vpop.f32.mrf.mxu0 }
 0x105   : > { %v4282_v50 = vadd.f32 %v891_v56, %v599_v27  ;;  %v901_v30 = vpop.f32.mrf.mxu1 }
 0x106   : > { %v3190_v36 = vpop.f32.mrf.mxu0 }
 0x107   : > { %v4284_v44 = vadd.f32 %v3240_v11, %v3190_v36  ;;  %v3243_v58 = vpop.f32.mrf.mxu1 }
 0x108   : > { %v609_v46 = vpop.f32.mrf.mxu0 }
 0x109   : > { %v4286_v41 = vadd.f32 %v901_v30, %v609_v46  ;;  %v911_v5 = vpop.f32.mrf.mxu1 }
 0x10a   : > { %v3193_v2 = vpop.f32.mrf.mxu0 }
 0x10b   : > { %5397 = vst [vmem:[#allocation14_spill] sm:$0xff] %v4286_v41  ;;  %v4288_v52 = vadd.f32 %v3243_v58, %v3193_v2  ;;  %v3246_v54 = vpop.f32.mrf.mxu1  ;;  %v2059_v41 = vlaneseq }
 0x10c   : > { %v619_v9 = vpop.f32.mrf.mxu0 }
 0x10d   : > { %5398 = vst [vmem:[#allocation18_spill] sm:$0xff] %v4288_v52  ;;  %v4290_v21 = vadd.f32 %v911_v5, %v619_v9  ;;  %v921_v10 = vpop.f32.mrf.mxu1 }
 0x10e   : > { %v3196_v62 = vpop.f32.mrf.mxu0 }
 0x10f   : > { %5399 = vst [vmem:[#allocation16_spill] sm:$0xff] %v4290_v21  ;;  %v4292_v12 = vadd.f32 %v3246_v54, %v3196_v62  ;;  %v3249_v45 = vpop.f32.mrf.mxu1 }
 0x110   : > { %v629_v29 = vpop.f32.mrf.mxu0 }
 0x111   : > { %5400 = vst [vmem:[#allocation21_spill] sm:$0xff] %v4292_v12  ;;  %v4294_v32 = vadd.f32 %v921_v10, %v629_v29  ;;  %v931_v19 = vpop.f32.mrf.mxu1 }
 0x112   : > { %v3199_v0 = vpop.f32.mrf.mxu0 }
 0x113   : > { %5401 = vst [vmem:[#allocation17_spill] sm:$0xff] %v4294_v32  ;;  %v4296_v48 = vadd.f32 %v3249_v45, %v3199_v0  ;;  %v3304_v55 = vpop.f32.mrf.mxu1 }
 0x114   : > { %v639_v31 = vpop.f32.mrf.mxu0 }
 0x115   : > { %5402 = vst [vmem:[#allocation22_spill] sm:$0xff] %v4296_v48  ;;  %v4298_v15 = vadd.f32 %v931_v19, %v639_v31  ;;  %v1237_v24 = vpop.f32.mrf.mxu1 }
 0x116   : > { %v3254_v25 = vpop.f32.mrf.mxu0 }
 0x117   : > { %5403 = vst [vmem:[#allocation20_spill] sm:$0xff] %v4298_v15  ;;  %v4300_v57 = vadd.f32 %v3304_v55, %v3254_v25  ;;  %v3307_v28 = vpop.f32.mrf.mxu1 }
 0x118   : > { %v1011_v23 = vpop.f32.mrf.mxu0 }
 0x119   : > { %v4302_v49 = vadd.f32 %v1237_v24, %v1011_v23  ;;  %v1247_v63 = vpop.f32.mrf.mxu1 }
 0x11a   : > { %v3257_v40 = vpop.f32.mrf.mxu0 }
 0x11b   : > { %v4304_v39 = vadd.f32 %v3307_v28, %v3257_v40  ;;  %v3310_v8 = vpop.f32.mrf.mxu1 }
 0x11c   : > { %v1021_v37 = vpop.f32.mrf.mxu0 }
 0x11d   : > { %v4306_v33 = vadd.f32 %v1247_v63, %v1021_v37  ;;  %v1257_v56 = vpop.f32.mrf.mxu1 }
 0x11e   : > { %v3260_v42 = vpop.f32.mrf.mxu0 }
 0x11f   : > { %v4308_v11 = vadd.f32 %v3310_v8, %v3260_v42  ;;  %v3313_v27 = vpop.f32.mrf.mxu1 }
 0x120   : > { %v1031_v30 = vpop.f32.mrf.mxu0 }
 0x121   : > { %v4310_v36 = vadd.f32 %v1257_v56, %v1031_v30  ;;  %v1267_v58 = vpop.f32.mrf.mxu1 }
 0x122   : > { %v3263_v46 = vpop.f32.mrf.mxu0 }
 0x123   : > { %v4312_v5 = vadd.f32 %v3313_v27, %v3263_v46  ;;  %v3316_v2 = vpop.f32.mrf.mxu1 }
 0x124   : > { %v1041_v54 = vpop.f32.mrf.mxu0 }
 0x125   : > { %v4314_v9 = vadd.f32 %v1267_v58, %v1041_v54  ;;  %v1277_v10 = vpop.f32.mrf.mxu1 }
 0x126   : > { %v3266_v62 = vpop.f32.mrf.mxu0 }
 0x127   : > { %v4316_v45 = vadd.f32 %v3316_v2, %v3266_v62  ;;  %v3319_v29 = vpop.f32.mrf.mxu1 }
 0x128   : > { %v1051_v19 = vpop.f32.mrf.mxu0 }
 0x129   : > { %v4318_v0 = vadd.f32 %v1277_v10, %v1051_v19  ;;  %v1287_v55 = vpop.f32.mrf.mxu1 }
 0x12a   : > { %v3269_v31 = vpop.f32.mrf.mxu0 }
 0x12b   : > { %v4320_v24 = vadd.f32 %v3319_v29, %v3269_v31  ;;  %v3322_v25 = vpop.f32.mrf.mxu1 }
 0x12c   : > { %v1061_v28 = vpop.f32.mrf.mxu0 }
 0x12d   : > { %v4322_v23 = vadd.f32 %v1287_v55, %v1061_v28  ;;  %v1297_v63 = vpop.f32.mrf.mxu1 }
 0x12e   : > { %v3272_v40 = vpop.f32.mrf.mxu0 }
 0x12f   : > { %v4324_v8 = vadd.f32 %v3322_v25, %v3272_v40  ;;  %v3325_v37 = vpop.f32.mrf.mxu1 }
 0x130   : > { %v1071_v56 = vpop.f32.mrf.mxu0 }
 0x131   : > { %v4326_v42 = vadd.f32 %v1297_v63, %v1071_v56  ;;  %v1307_v27 = vpop.f32.mrf.mxu1 }
 0x132   : > { %v3275_v30 = vpop.f32.mrf.mxu0 }
 0x133   : > { %v4328_v58 = vadd.f32 %v3325_v37, %v3275_v30  ;;  %v3328_v46 = vpop.f32.mrf.mxu1 }
 0x134   : > { %v1081_v2 = vpop.f32.mrf.mxu0 }
 0x135   : > { %v4330_v54 = vadd.f32 %v1307_v27, %v1081_v2  ;;  %v1317_v10 = vpop.f32.mrf.mxu1 }
 0x136   : > { %v3278_v62 = vpop.f32.mrf.mxu0 }
 0x137   : > { %v4332_v29 = vadd.f32 %v3328_v46, %v3278_v62  ;;  %v3331_v19 = vpop.f32.mrf.mxu1 }
 0x138   : > { %v1091_v55 = vpop.f32.mrf.mxu0 }
 0x139   : > { %v4334_v31 = vadd.f32 %v1317_v10, %v1091_v55  ;;  %v1327_v25 = vpop.f32.mrf.mxu1 }
 0x13a   : > { %v3281_v28 = vpop.f32.mrf.mxu0 }
 0x13b   : > { %v4336_v63 = vadd.f32 %v3331_v19, %v3281_v28  ;;  %v3334_v40 = vpop.f32.mrf.mxu1 }
 0x13c   : > { %v1101_v56 = vpop.f32.mrf.mxu0 }
 0x13d   : > { %v4338_v37 = vadd.f32 %v1327_v25, %v1101_v56  ;;  %v1337_v30 = vpop.f32.mrf.mxu1 }
 0x13e   : > { %v3284_v15 = vpop.f32.mrf.mxu0 }
 0x13f   : > { %v4340_v27 = vadd.f32 %v3334_v40, %v3284_v15  ;;  %v3337_v2 = vpop.f32.mrf.mxu1 }
 0x140   : > { %v1111_v48 = vpop.f32.mrf.mxu0 }
 0x141   : > { %v4342_v46 = vadd.f32 %v1337_v30, %v1111_v48  ;;  %v1347_v62 = vpop.f32.mrf.mxu1 }
 0x142   : > { %v3287_v32 = vpop.f32.mrf.mxu0 }
 0x143   : > { %5404 = vst [vmem:[#allocation24_spill] sm:$0xff] %v4342_v46  ;;  %v4344_v10 = vadd.f32 %v3337_v2, %v3287_v32  ;;  %v3340_v55 = vpop.f32.mrf.mxu1 }
 0x144   : > { %v1121_v12 = vpop.f32.mrf.mxu0 }
 0x145   : > { %5405 = vst [vmem:[#allocation3_spill] sm:$0xff] %v4344_v10  ;;  %v4346_v19 = vadd.f32 %v1347_v62, %v1121_v12  ;;  %v1357_v28 = vpop.f32.mrf.mxu1  ;;  %v4356_v12 = vshrl.u32 %v2059_v41, 7 }
 0x146   : > { %v3290_v21 = vpop.f32.mrf.mxu0 }
 0x147   : > { %5406 = vst [vmem:[#allocation4_spill] sm:$0xff] %v4346_v19  ;;  %v4348_v25 = vadd.f32 %v3340_v55, %v3290_v21  ;;  %v3343_v56 = vpop.f32.mrf.mxu1  ;;  %5410 = vst [vmem:[#allocation8_spill] sm:$0xff] %v4356_v12 }
 0x148   : > { %v1131_v52 = vpop.f32.mrf.mxu0 }
 0x149   : > { %5407 = vst [vmem:[#allocation5_spill] sm:$0xff] %v4348_v25  ;;  %v4350_v15 = vadd.f32 %v1357_v28, %v1131_v52  ;;  %v1367_v40 = vpop.f32.mrf.mxu1  ;;  %v2061_v28 = vsub.s32 0, %v4356_v12 }
 0x14a   : > { %v3293_v48 = vpop.f32.mrf.mxu0 }
 0x14b   : > { %5408 = vst [vmem:[#allocation6_spill] sm:$0xff] %v4350_v15  ;;  %v4352_v30 = vadd.f32 %v3343_v56, %v3293_v48  ;;  %v3346_v46 = vpop.f32.mrf.mxu1  ;;  %v171_v56 = vld [vmem:[%s5312_s2] sm:$0xf] }
 0x14c   : > { %v1141_v32 = vpop.f32.mrf.mxu0  ;;  %v4366_v41 = vrot.slane %v171_v56, %v2061_v28 }
 0x14d   : > { %v4354_v2 = vadd.f32 %v1367_v40, %v1141_v32  ;;  %v1377_v10 = vpop.f32.mrf.mxu1 }
 0x14e   : > { %v3296_v62 = vpop.f32.mrf.mxu0 }
 0x14f   : > { %5409 = vst [vmem:[#allocation7_spill] sm:$0xff] %v4354_v2  ;;  %v4358_v19 = vadd.f32 %v3346_v46, %v3296_v62  ;;  %v3349_v21 = vpop.f32.mrf.mxu1 }
 0x150   : > { %v1151_v55 = vpop.f32.mrf.mxu0 }
 0x151   : > { %5411 = vst [vmem:[#allocation9_spill] sm:$0xff] %v4358_v19  ;;  %v4360_v25 = vadd.f32 %v1377_v10, %v1151_v55  ;;  %v1387_v52 = vpop.f32.mrf.mxu1 }
 0x152   : > { %v3299_v15 = vpop.f32.mrf.mxu0 }
 0x153   : > { %5412 = vst [vmem:[#allocation10_spill] sm:$0xff] %v4360_v25  ;;  %v3404_v40 = vpop.f32.mrf.mxu1 }
 0x154   : > { %v1161_v48 = vpop.f32.mrf.mxu0 }
 0x155   : > { %v1872_v32 = vpop.f32.mrf.mxu1 }
 0x156   : > { %v3354_v2 = vpop.f32.mrf.mxu0 }
 0x157   : > { %v1770_v46 = vadd.f32 %v3354_v2, %v4236_v16  ;;  %v3407_v62 = vpop.f32.mrf.mxu1 }
 0x158   : > { %v1610_v21 = vpop.f32.mrf.mxu0 }
 0x159   : > { %v2064_v10 = vadd.f32 %v4366_v41, %v1770_v46  ;;  %v1769_v55 = vadd.f32 %v1610_v21, %v4238_v43  ;;  %v1882_v52 = vpop.f32.mrf.mxu1 }
 0x15a   : > { %v3357_v15 = vpop.f32.mrf.mxu0 }
 0x15b   : > { %2096 = vst.msk [vmem:[#allocation2 + $0x8] sm:$0xff] %vm5342_vm1, %v2064_v10  ;;  %v2063_v12 = vadd.f32 %v4366_v41, %v1769_v55  ;;  %v1772_v48 = vadd.f32 %v3357_v15, %v4240_v20  ;;  %v3410_v25 = vpop.f32.mrf.mxu1 }
 0x15c   : > { %v1620_v28 = vpop.f32.mrf.mxu0 }
 0x15d   : > { %2095 = vst.msk [vmem:[#allocation2] sm:$0xff] %vm5342_vm1, %v2063_v12  ;;  %v2066_v16 = vadd.f32 %v4366_v41, %v1772_v48  ;;  %v1771_v2 = vadd.f32 %v1620_v28, %v4242_v51  ;;  %v1892_v56 = vpop.f32.mrf.mxu1 }
 0x15e   : > { %v3360_v46 = vpop.f32.mrf.mxu0 }
 0x15f   : > { %2098 = vst.msk [vmem:[#allocation2 + $0x18] sm:$0xff] %vm5342_vm1, %v2066_v16  ;;  %v2065_v43 = vadd.f32 %v4366_v41, %v1771_v2  ;;  %v1774_v21 = vadd.f32 %v3360_v46, %v4244_v38  ;;  %v4380_v10 = vpop.f32.mrf.mxu1  ;;  %v2030_v2 = vadd.f32 %v3404_v40, %v4300_v57 }
 0x160   : > { %v1630_v55 = vpop.f32.mrf.mxu0 }
 0x161   : > { %2097 = vst.msk [vmem:[#allocation2 + $0x10] sm:$0xff] %vm5342_vm1, %v2065_v43  ;;  %v2068_v20 = vadd.f32 %v4366_v41, %v1774_v21  ;;  %v1773_v12 = vadd.f32 %v1630_v55, %v4246_v59  ;;  %v4385_v15 = vpop.f32.mrf.mxu1 }
 0x162   : > { %v3363_v51 = vpop.f32.mrf.mxu0 }
 0x163   : > { %2100 = vst.msk [vmem:[#allocation2 + $0x28] sm:$0xff] %vm5342_vm1, %v2068_v20  ;;  %v2067_v48 = vadd.f32 %v4366_v41, %v1773_v12  ;;  %v1776_v28 = vadd.f32 %v3363_v51, %v4248_v4  ;;  %v3416_v16 = vpop.f32.mrf.mxu1  ;;  %v2029_v20 = vadd.f32 %v1872_v32, %v4302_v49 }
 0x164   : > { %v1640_v38 = vpop.f32.mrf.mxu0  ;;  %v4401_v57 = vld [vmem:[#allocation2] sm:$0xff] }
 0x165   : > { %2099 = vst.msk [vmem:[#allocation2 + $0x20] sm:$0xff] %vm5342_vm1, %v2067_v48  ;;  %v2070_v46 = vadd.f32 %v4366_v41, %v1776_v28  ;;  %v4393_v43 = vpop.f32.mrf.mxu1  ;;  %v1775_v21 = vadd.f32 %v1640_v38, %v4250_v3  ;;  %v2032_v28 = vadd.f32 %v3407_v62, %v4304_v39  ;;  %v2320_v39 = vmul.f32 %v4401_v57, %v4401_v57 }
 0x166   : > { %v2129_v59 = vld [vmem:[#allocation2 + $0x18] sm:$0xff]  ;;  %v3366_v55 = vpop.f32.mrf.mxu0 }
 0x167   : > { %v2159_v19 = vadd.f32 %v2129_v59, %v2030_v2  ;;  %2102 = vst.msk [vmem:[#allocation2 + $0x38] sm:$0xff] %vm5342_vm1, %v2070_v46  ;;  %v1778_v4 = vadd.f32 %v3366_v55, %v4252_v60  ;;  %v4399_v12 = vpop.f32.mrf.mxu1  ;;  %v2069_v51 = vadd.f32 %v4366_v41, %v1775_v21  ;;  %v4410_v60 = vld [vmem:[#allocation2 + $0x8] sm:$0xff]  ;;  %v2031_v2 = vadd.f32 %v1882_v52, %v4306_v33 }
 0x168   : > { %v2128_v40 = vld [vmem:[#allocation2 + $0x10] sm:$0xff]  ;;  %v1650_v48 = vpop.f32.mrf.mxu0  ;;  %v2034_v33 = vadd.f32 %v3410_v25, %v4308_v11  ;;  %v2033_v11 = vadd.f32 %v1892_v56, %v4310_v36  ;;  %v2036_v36 = vadd.f32 %v4380_v10, %v4312_v5  ;;  %v2035_v56 = vadd.f32 %v4385_v15, %v4314_v9 }
 0x169   : > { %2189 = vst.msk [vmem:[#allocation2 + $0x18] sm:$0xff] %vm5342_vm1, %v2159_v19  ;;  %v2158_v3 = vadd.f32 %v2128_v40, %v2029_v20  ;;  %v2072_v49 = vadd.f32 %v4366_v41, %v1778_v4  ;;  %v1777_v32 = vadd.f32 %v1650_v48, %v4254_v22  ;;  %v4408_v38 = vpop.f32.mrf.mxu1  ;;  %2101 = vst.msk [vmem:[#allocation2 + $0x30] sm:$0xff] %vm5342_vm1, %v2069_v51 }
 0x16a   : > { %v2131_v46 = vld [vmem:[#allocation2 + $0x28] sm:$0xff]  ;;  %v3369_v59 = vpop.f32.mrf.mxu0  ;;  %v2321_v20 = vmul.f32 %v4410_v60, %v4410_v60 }
 0x16b   : > { %2188 = vst.msk [vmem:[#allocation2 + $0x10] sm:$0xff] %vm5342_vm1, %v2158_v3  ;;  %v2161_v19 = vadd.f32 %v2131_v46, %v2032_v28  ;;  %2104 = vst.msk [vmem:[#allocation2 + $0x48] sm:$0xff] %vm5342_vm1, %v2072_v49  ;;  %v2071_v22 = vadd.f32 %v4366_v41, %v1777_v32  ;;  %v1780_v62 = vadd.f32 %v3369_v59, %v4256_v7  ;;  %v4420_v21 = vpop.f32.mrf.mxu1  ;;  %v2250_v7 = vsel %vm5342_vm1, %v4401_v57, 0.0 }
 0x16c   : > { %v2130_v52 = vld [vmem:[#allocation2 + $0x20] sm:$0xff]  ;;  %v1660_v55 = vpop.f32.mrf.mxu0  ;;  %v2352_v3 = vsel %vm5342_vm1, %v2320_v39, 0.0  ;;  %v2251_v46 = vsel %vm5342_vm1, %v4410_v60, 0.0  ;;  %v2038_v39 = vadd.f32 %v3416_v16, %v4316_v45 }
 0x16d   : > { %2191 = vst.msk [vmem:[#allocation2 + $0x28] sm:$0xff] %vm5342_vm1, %v2161_v19  ;;  %v2160_v4 = vadd.f32 %v2130_v52, %v2031_v2  ;;  %2103 = vst.msk [vmem:[#allocation2 + $0x40] sm:$0xff] %vm5342_vm1, %v2071_v22  ;;  %v2074_v40 = vadd.f32 %v4366_v41, %v1780_v62  ;;  %v1779_v51 = vadd.f32 %v1660_v55, %v4258_v47  ;;  %v4429_v48 = vpop.f32.mrf.mxu1  ;;  %v2353_v22 = vsel %vm5342_vm1, %v2321_v20, 0.0 }
 0x16e   : > { %v2133_v25 = vld [vmem:[#allocation2 + $0x38] sm:$0xff]  ;;  %v3372_v28 = vpop.f32.mrf.mxu0  ;;  %v2252_v9 = vadd.f32 %v2251_v46, %v2250_v7  ;;  %v2354_v15 = vadd.f32 %v2353_v22, %v2352_v3  ;;  %v2037_v52 = vadd.f32 %v4393_v43, %v4318_v0  ;;  %v4477_v43 = vadd.f32 %v4408_v38, %v4322_v23 }
 0x16f   : > { %2190 = vst.msk [vmem:[#allocation2 + $0x20] sm:$0xff] %vm5342_vm1, %v2160_v4  ;;  %v2163_v49 = vadd.f32 %v2133_v25, %v2034_v33  ;;  %2106 = vst.msk [vmem:[#allocation2 + $0x58] sm:$0xff] %vm5342_vm1, %v2074_v40  ;;  %v2073_v32 = vadd.f32 %v4366_v41, %v1779_v51  ;;  %v1782_v47 = vadd.f32 %v3372_v28, %v4260_v18  ;;  %v4439_v2 = vpop.f32.mrf.mxu1 }
 0x170   : > { %v4443_v59 = vld [vmem:[#allocation2 + $0x18] sm:$0xff]  ;;  %v1670_v19 = vpop.f32.mrf.mxu0  ;;  %v2132_v62 = vld [vmem:[#allocation2 + $0x30] sm:$0xff] }
 0x171   : > { %v2323_v18 = vmul.f32 %v4443_v59, %v4443_v59  ;;  %2193 = vst.msk [vmem:[#allocation2 + $0x38] sm:$0xff] %vm5342_vm1, %v2163_v49  ;;  %2105 = vst.msk [vmem:[#allocation2 + $0x50] sm:$0xff] %vm5342_vm1, %v2073_v32  ;;  %v2076_v33 = vadd.f32 %v4366_v41, %v1782_v47  ;;  %v1781_v5 = vadd.f32 %v1670_v19, %v4262_v6  ;;  %v4457_v10 = vpop.f32.mrf.mxu1 }
 0x172   : > { %v4459_v45 = vld [vmem:[#allocation2 + $0x10] sm:$0xff]  ;;  %v2162_v16 = vadd.f32 %v2132_v62, %v2033_v11  ;;  %v2135_v55 = vld [vmem:[#allocation2 + $0x48] sm:$0xff]  ;;  %v3375_v20 = vpop.f32.mrf.mxu0  ;;  %v2040_v6 = vadd.f32 %v4399_v12, %v4320_v24  ;;  %v2255_v24 = vsel %vm5342_vm1, %v4443_v59, 0.0 }
 0x173   : > { %v2253_v4 = vsel %vm5342_vm1, %v4459_v45, 0.0  ;;  %v2322_v40 = vmul.f32 %v4459_v45, %v4459_v45  ;;  %v2165_v51 = vadd.f32 %v2135_v55, %v2036_v36  ;;  %2108 = vst.msk [vmem:[#allocation2 + $0x68] sm:$0xff] %vm5342_vm1, %v2076_v33  ;;  %v4470_v7 = vpop.f32.mrf.mxu1  ;;  %v2075_v28 = vadd.f32 %v4366_v41, %v1781_v5 }
 0x174   : > { %v2254_v11 = vadd.f32 %v2253_v4, %v2252_v9  ;;  %v4472_v25 = vld [vmem:[#allocation2 + $0x28] sm:$0xff]  ;;  %2192 = vst.msk [vmem:[#allocation2 + $0x30] sm:$0xff] %vm5342_vm1, %v2162_v16  ;;  %v2134_v0 = vld [vmem:[#allocation2 + $0x40] sm:$0xff]  ;;  %v1784_v3 = vadd.f32 %v3375_v20, %v4264_v13  ;;  %v1680_v49 = vpop.f32.mrf.mxu0  ;;  %v2357_v12 = vsel %vm5342_vm1, %v2323_v18, 0.0 }
 0x175   : > { %v2355_v32 = vsel %vm5342_vm1, %v2322_v40, 0.0  ;;  %2195 = vst.msk [vmem:[#allocation2 + $0x48] sm:$0xff] %vm5342_vm1, %v2165_v51  ;;  %v2164_v47 = vadd.f32 %v2134_v0, %v2035_v56  ;;  %v4486_v46 = vpop.f32.mrf.mxu1  ;;  %2107 = vst.msk [vmem:[#allocation2 + $0x60] sm:$0xff] %vm5342_vm1, %v2075_v28  ;;  %v1783_v22 = vadd.f32 %v1680_v49, %v4266_v26  ;;  %v2325_v18 = vmul.f32 %v4472_v25, %v4472_v25 }
 0x176   : > { %v2356_v36 = vadd.f32 %v2355_v32, %v2354_v15  ;;  %v4488_v23 = vld [vmem:[#allocation2 + $0x20] sm:$0xff]  ;;  %v2256_v38 = vadd.f32 %v2255_v24, %v2254_v11  ;;  %v2137_v19 = vld [vmem:[#allocation2 + $0x58] sm:$0xff]  ;;  %v2078_v13 = vadd.f32 %v4366_v41, %v1784_v3  ;;  %v3378_v62 = vpop.f32.mrf.mxu0  ;;  %v2042_v26 = vadd.f32 %v4420_v21, %v4324_v8 }
 0x177   : > { %v2257_v56 = vsel %vm5342_vm1, %v4488_v23, 0.0  ;;  %v2324_v33 = vmul.f32 %v4488_v23, %v4488_v23  ;;  %2194 = vst.msk [vmem:[#allocation2 + $0x40] sm:$0xff] %vm5342_vm1, %v2164_v47  ;;  %v2167_v5 = vadd.f32 %v2137_v19, %v2038_v39  ;;  %v4500_v9 = vpop.f32.mrf.mxu1  ;;  %v2077_v4 = vadd.f32 %v4366_v41, %v1783_v22 }
 0x178   : > { %v2258_v15 = vadd.f32 %v2257_v56, %v2256_v38  ;;  %v2358_v16 = vadd.f32 %v2357_v12, %v2356_v36  ;;  %v4502_v55 = vld [vmem:[#allocation2 + $0x38] sm:$0xff]  ;;  %v2136_v20 = vld [vmem:[#allocation2 + $0x50] sm:$0xff]  ;;  %2110 = vst.msk [vmem:[#allocation2 + $0x78] sm:$0xff] %vm5342_vm1, %v2078_v13  ;;  %v1690_v40 = vpop.f32.mrf.mxu0  ;;  %v2259_v51 = vsel %vm5342_vm1, %v4472_v25, 0.0  ;;  %v2041_v0 = vadd.f32 %v4429_v48, %v4326_v42 }
 0x179   : > { %v2359_v39 = vsel %vm5342_vm1, %v2324_v33, 0.0  ;;  %2197 = vst.msk [vmem:[#allocation2 + $0x58] sm:$0xff] %vm5342_vm1, %v2167_v5  ;;  %v2166_v11 = vadd.f32 %v2136_v20, %v2037_v52  ;;  %v4514_v28 = vpop.f32.mrf.mxu1  ;;  %v2327_v21 = vmul.f32 %v4502_v55, %v4502_v55  ;;  %2109 = vst.msk [vmem:[#allocation2 + $0x70] sm:$0xff] %vm5342_vm1, %v2077_v4  ;;  %v1786_v24 = vadd.f32 %v3378_v62, %v4268_v53 }
 0x17a   : > { %v2360_v8 = vadd.f32 %v2359_v39, %v2358_v16  ;;  %v2260_v3 = vadd.f32 %v2259_v51, %v2258_v15  ;;  %v2139_v49 = vld [vmem:[#allocation2 + $0x68] sm:$0xff]  ;;  %v3381_v12 = vpop.f32.mrf.mxu0  ;;  %v2361_v32 = vsel %vm5342_vm1, %v2325_v18, 0.0  ;;  %v4526_v48 = vadd.f32 %v4439_v2, %v4328_v58 }
 0x17b   : > { %v4521_v47 = vld [vmem:[#allocation2 + $0x30] sm:$0xff]  ;;  %2196 = vst.msk [vmem:[#allocation2 + $0x50] sm:$0xff] %vm5342_vm1, %v2166_v11  ;;  %v2169_v42 = vadd.f32 %v2139_v49, %v2040_v6  ;;  %v1785_v52 = vadd.f32 %v1690_v40, %v4270_v61  ;;  %v4529_v36 = vpop.f32.mrf.mxu1  ;;  %v2080_v22 = vadd.f32 %v4366_v41, %v1786_v24  ;;  %v2263_v58 = vsel %vm5342_vm1, %v4502_v55, 0.0 }
 0x17c   : > { %v2261_v38 = vsel %vm5342_vm1, %v4521_v47, 0.0  ;;  %v2326_v53 = vmul.f32 %v4521_v47, %v4521_v47  ;;  %v2362_v19 = vadd.f32 %v2361_v32, %v2360_v8  ;;  %v4535_v13 = vld [vmem:[#allocation2 + $0x48] sm:$0xff]  ;;  %v1700_v6 = vpop.f32.mrf.mxu0  ;;  %v2138_v61 = vld [vmem:[#allocation2 + $0x60] sm:$0xff]  ;;  %v4543_v62 = vadd.f32 %v4457_v10, %v4330_v54 }
 0x17d   : > { %v2262_v2 = vadd.f32 %v2261_v38, %v2260_v3  ;;  %2199 = vst.msk [vmem:[#allocation2 + $0x68] sm:$0xff] %vm5342_vm1, %v2169_v42  ;;  %v2079_v18 = vadd.f32 %v4366_v41, %v1785_v52  ;;  %v4546_v56 = vpop.f32.mrf.mxu1  ;;  %v2365_v33 = vsel %vm5342_vm1, %v2327_v21, 0.0  ;;  %v2168_v16 = vadd.f32 %v2138_v61, %v4477_v43  ;;  %2112 = vst.msk [vmem:[#allocation2 + $0x88] sm:$0xff] %vm5342_vm1, %v2080_v22 }
 0x17e   : > { %v2363_v5 = vsel %vm5342_vm1, %v2326_v53, 0.0  ;;  %v4550_v15 = vld [vmem:[#allocation2 + $0x40] sm:$0xff]  ;;  %v1788_v20 = vadd.f32 %v3381_v12, %v4272_v34  ;;  %v3384_v4 = vpop.f32.mrf.mxu0  ;;  %v2329_v54 = vmul.f32 %v4535_v13, %v4535_v13  ;;  %v1787_v21 = vadd.f32 %v1700_v6, %v4274_v35 }
 0x17f   : > { %v2364_v40 = vadd.f32 %v2363_v5, %v2362_v19  ;;  %v2264_v10 = vadd.f32 %v2263_v58, %v2262_v2  ;;  %v2265_v51 = vsel %vm5342_vm1, %v4550_v15, 0.0  ;;  %v2141_v39 = vld [vmem:[#allocation2 + $0x78] sm:$0xff]  ;;  %2111 = vst.msk [vmem:[#allocation2 + $0x80] sm:$0xff] %vm5342_vm1, %v2079_v18  ;;  %v4560_v11 = vpop.f32.mrf.mxu1  ;;  %v2328_v43 = vmul.f32 %v4550_v15, %v4550_v15  ;;  %2198 = vst.msk [vmem:[#allocation2 + $0x60] sm:$0xff] %vm5342_vm1, %v2168_v16 }
 0x180   : > { %v2171_v34 = vadd.f32 %v2141_v39, %v2042_v26  ;;  %v2082_v8 = vadd.f32 %v4366_v41, %v1788_v20  ;;  %v1710_v3 = vpop.f32.mrf.mxu0  ;;  %v4567_v12 = vld [vmem:[#allocation2 + $0x58] sm:$0xff]  ;;  %v2046_v32 = vadd.f32 %v4470_v7, %v4332_v29  ;;  %v2140_v42 = vld [vmem:[#allocation2 + $0x70] sm:$0xff]  ;;  %v4573_v52 = vadd.f32 %v4486_v46, %v4334_v31 }
 0x181   : > { %v2266_v49 = vadd.f32 %v2265_v51, %v2264_v10  ;;  %v2366_v24 = vadd.f32 %v2365_v33, %v2364_v40  ;;  %v4575_v38 = vpop.f32.mrf.mxu1  ;;  %v2267_v26 = vsel %vm5342_vm1, %v4535_v13, 0.0  ;;  %v2367_v35 = vsel %vm5342_vm1, %v2328_v43, 0.0 }
 0x182   : > { %v4580_v53 = vld [vmem:[#allocation2 + $0x50] sm:$0xff]  ;;  %2201 = vst.msk [vmem:[#allocation2 + $0x78] sm:$0xff] %vm5342_vm1, %v2171_v34  ;;  %v2170_v19 = vadd.f32 %v2140_v42, %v2041_v0  ;;  %2114 = vst.msk [vmem:[#allocation2 + $0x98] sm:$0xff] %vm5342_vm1, %v2082_v8  ;;  %v2081_v29 = vadd.f32 %v4366_v41, %v1787_v21  ;;  %v3387_v7 = vpop.f32.mrf.mxu0  ;;  %v2369_v31 = vsel %vm5342_vm1, %v2329_v54, 0.0  ;;  %v2331_v2 = vmul.f32 %v4567_v12, %v4567_v12 }
 0x183   : > { %v2368_v46 = vadd.f32 %v2367_v35, %v2366_v24  ;;  %v2268_v22 = vadd.f32 %v2267_v26, %v2266_v49  ;;  %v2269_v6 = vsel %vm5342_vm1, %v4580_v53, 0.0  ;;  %v4588_v58 = vpop.f32.mrf.mxu1  ;;  %v2330_v0 = vmul.f32 %v4580_v53, %v4580_v53 }
 0x184   : > { %v4594_v61 = vld [vmem:[#allocation2 + $0x68] sm:$0xff]  ;;  %2200 = vst.msk [vmem:[#allocation2 + $0x70] sm:$0xff] %vm5342_vm1, %v2170_v19  ;;  %2113 = vst.msk [vmem:[#allocation2 + $0x90] sm:$0xff] %vm5342_vm1, %v2081_v29  ;;  %v1790_v18 = vadd.f32 %v3384_v4, %v4276_v17  ;;  %v1789_v33 = vadd.f32 %v1710_v3, %v4278_v14  ;;  %v1720_v5 = vpop.f32.mrf.mxu0  ;;  %v2271_v16 = vsel %vm5342_vm1, %v4567_v12, 0.0  ;;  %v2048_v49 = vadd.f32 %v4500_v9, %v4336_v63 }
 0x185   : > { %v2270_v20 = vadd.f32 %v2269_v6, %v2268_v22  ;;  %v2370_v40 = vadd.f32 %v2369_v31, %v2368_v46  ;;  %v2333_v54 = vmul.f32 %v4594_v61, %v4594_v61  ;;  %v2143_v10 = vld [vmem:[#allocation2 + $0x88] sm:$0xff]  ;;  %v4604_v51 = vpop.f32.mrf.mxu1  ;;  %v2371_v39 = vsel %vm5342_vm1, %v2330_v0, 0.0 }
 0x186   : > { %v2173_v43 = vadd.f32 %v2143_v10, %v4526_v48  ;;  %v2142_v34 = vld [vmem:[#allocation2 + $0x80] sm:$0xff]  ;;  %v2084_v17 = vadd.f32 %v4366_v41, %v1790_v18  ;;  %v2083_v14 = vadd.f32 %v4366_v41, %v1789_v33  ;;  %v3390_v4 = vpop.f32.mrf.mxu0  ;;  %v2373_v26 = vsel %vm5342_vm1, %v2331_v2, 0.0 }
 0x187   : > { %v2372_v8 = vadd.f32 %v2371_v39, %v2370_v40  ;;  %v4610_v21 = vld [vmem:[#allocation2 + $0x60] sm:$0xff]  ;;  %v2272_v3 = vadd.f32 %v2271_v16, %v2270_v20  ;;  %v2172_v24 = vadd.f32 %v2142_v34, %v4543_v62  ;;  %v4615_v42 = vpop.f32.mrf.mxu1  ;;  %v1792_v63 = vadd.f32 %v3387_v7, %v4280_v1 }
 0x188   : > { %v2273_v48 = vsel %vm5342_vm1, %v4610_v21, 0.0  ;;  %v2332_v35 = vmul.f32 %v4610_v21, %v4610_v21  ;;  %2203 = vst.msk [vmem:[#allocation2 + $0x88] sm:$0xff] %vm5342_vm1, %v2173_v43  ;;  %2116 = vst.msk [vmem:[#allocation2 + $0xa8] sm:$0xff] %vm5342_vm1, %v2084_v17  ;;  %v1730_v9 = vpop.f32.mrf.mxu0  ;;  %v2047_v31 = vadd.f32 %v4514_v28, %v4338_v37  ;;  %v1791_v22 = vadd.f32 %v1720_v5, %v4282_v50 }
 0x189   : > { %2115 = vst.msk [vmem:[#allocation2 + $0xa0] sm:$0xff] %vm5342_vm1, %v2083_v14  ;;  %v2274_v62 = vadd.f32 %v2273_v48, %v2272_v3  ;;  %v2374_v19 = vadd.f32 %v2373_v26, %v2372_v8  ;;  %v4626_v29 = vld [vmem:[#allocation2 + $0x78] sm:$0xff]  ;;  %2202 = vst.msk [vmem:[#allocation2 + $0x80] sm:$0xff] %vm5342_vm1, %v2172_v24  ;;  %v4632_v6 = vpop.f32.mrf.mxu1  ;;  %v2275_v2 = vsel %vm5342_vm1, %v4594_v61, 0.0  ;;  %v2377_v1 = vsel %vm5342_vm1, %v2333_v54, 0.0 }
 0x18a   : > { %v2145_v46 = vld [vmem:[#allocation2 + $0x98] sm:$0xff]  ;;  %v2375_v7 = vsel %vm5342_vm1, %v2332_v35, 0.0  ;;  %v3393_v18 = vpop.f32.mrf.mxu0  ;;  %v2086_v37 = vadd.f32 %v4366_v41, %v1792_v63  ;;  %v2085_v50 = vadd.f32 %v4366_v41, %v1791_v22  ;;  %v2335_v5 = vmul.f32 %v4626_v29, %v4626_v29 }
 0x18b   : > { %v2175_v0 = vadd.f32 %v2145_v46, %v2046_v32  ;;  %v2376_v33 = vadd.f32 %v2375_v7, %v2374_v19  ;;  %v4638_v16 = vld [vmem:[#allocation2 + $0x70] sm:$0xff]  ;;  %v2276_v20 = vadd.f32 %v2275_v2, %v2274_v62  ;;  %v4642_v28 = vpop.f32.mrf.mxu1  ;;  %v2050_v17 = vadd.f32 %v4529_v36, %v4340_v27  ;;  %v5414_v48 = vld [vmem:[#allocation14_spill] sm:$0xff] }
 0x18c   : > { %v2144_v40 = vld [vmem:[#allocation2 + $0x90] sm:$0xff]  ;;  %v2277_v54 = vsel %vm5342_vm1, %v4638_v16, 0.0  ;;  %v2334_v32 = vmul.f32 %v4638_v16, %v4638_v16  ;;  %v1740_v39 = vpop.f32.mrf.mxu0  ;;  %2118 = vst.msk [vmem:[#allocation2 + $0xb8] sm:$0xff] %vm5342_vm1, %v2086_v37  ;;  %2117 = vst.msk [vmem:[#allocation2 + $0xb0] sm:$0xff] %vm5342_vm1, %v2085_v50  ;;  %v1794_v14 = vadd.f32 %v3390_v4, %v4284_v44  ;;  %v2279_v3 = vsel %vm5342_vm1, %v4626_v29, 0.0  ;;  %v5415_v46 = vld [vmem:[#allocation18_spill] sm:$0xff] }
 0x18d   : > { %2205 = vst.msk [vmem:[#allocation2 + $0x98] sm:$0xff] %vm5342_vm1, %v2175_v0  ;;  %v2174_v10 = vadd.f32 %v2144_v40, %v4573_v52  ;;  %v2278_v43 = vadd.f32 %v2277_v54, %v2276_v20  ;;  %v2378_v34 = vadd.f32 %v2377_v1, %v2376_v33  ;;  %v4657_v8 = vpop.f32.mrf.mxu1  ;;  %v5413_v52 = vld [vmem:[#allocation24_spill] sm:$0xff]  ;;  %v1793_v27 = vadd.f32 %v1730_v9, %v5414_v48  ;;  %v5416_v54 = vld [vmem:[#allocation3_spill] sm:$0xff] }
 0x18e   : > { %v2379_v24 = vsel %vm5342_vm1, %v2334_v32, 0.0  ;;  %v2049_v26 = vadd.f32 %v4546_v56, %v5413_v52  ;;  %v3396_v36 = vpop.f32.mrf.mxu0  ;;  %v2088_v19 = vadd.f32 %v4366_v41, %v1794_v14  ;;  %v1796_v22 = vadd.f32 %v3393_v18, %v5415_v46  ;;  %v5419_v52 = vld [vmem:[#allocation21_spill] sm:$0xff] }
 0x18f   : > { %2204 = vst.msk [vmem:[#allocation2 + $0x90] sm:$0xff] %vm5342_vm1, %v2174_v10  ;;  %v2380_v35 = vadd.f32 %v2379_v24, %v2378_v34  ;;  %v4666_v63 = vld [vmem:[#allocation2 + $0x88] sm:$0xff]  ;;  %v2280_v62 = vadd.f32 %v2279_v3, %v2278_v43  ;;  %v3449_v2 = vpop.f32.mrf.mxu1  ;;  %v2381_v1 = vsel %vm5342_vm1, %v2335_v5, 0.0  ;;  %v2087_v18 = vadd.f32 %v4366_v41, %v1793_v27 }
 0x190   : > { %v2147_v44 = vld [vmem:[#allocation2 + $0xa8] sm:$0xff]  ;;  %v2146_v4 = vld [vmem:[#allocation2 + $0xa0] sm:$0xff]  ;;  %v2337_v7 = vmul.f32 %v4666_v63, %v4666_v63  ;;  %v1750_v33 = vpop.f32.mrf.mxu0  ;;  %2120 = vst.msk [vmem:[#allocation2 + $0xc8] sm:$0xff] %vm5342_vm1, %v2088_v19  ;;  %v2090_v10 = vadd.f32 %v4366_v41, %v1796_v22  ;;  %v2283_v34 = vsel %vm5342_vm1, %v4666_v63, 0.0  ;;  %v1798_v48 = vadd.f32 %v3396_v36, %v5419_v52 }
 0x191   : > { %v4673_v56 = vld [vmem:[#allocation2 + $0x80] sm:$0xff]  ;;  %v2177_v9 = vadd.f32 %v2147_v44, %v2048_v49  ;;  %v2176_v0 = vadd.f32 %v2146_v4, %v2047_v31  ;;  %v2382_v37 = vadd.f32 %v2381_v1, %v2380_v35  ;;  %v2022_v50 = vpop.f32.mrf.mxu1  ;;  %v2052_v49 = vadd.f32 %v4560_v11, %v5416_v54  ;;  %v5417_v31 = vld [vmem:[#allocation4_spill] sm:$0xff]  ;;  %2119 = vst.msk [vmem:[#allocation2 + $0xc0] sm:$0xff] %vm5342_vm1, %v2087_v18  ;;  %v5420_v44 = vld [vmem:[#allocation5_spill] sm:$0xff] }
 0x192   : > { %v2281_v20 = vsel %vm5342_vm1, %v4673_v56, 0.0  ;;  %v2336_v40 = vmul.f32 %v4673_v56, %v4673_v56  ;;  %v4687_v32 = vadd.f32 %v4575_v38, %v5417_v31  ;;  %v3399_v43 = vpop.f32.mrf.mxu0  ;;  %v5418_v24 = vld [vmem:[#allocation16_spill] sm:$0xff]  ;;  %v2385_v38 = vsel %vm5342_vm1, %v2337_v7, 0.0  ;;  %2122 = vst.msk [vmem:[#allocation2 + $0xd8] sm:$0xff] %vm5342_vm1, %v2090_v10 }
 0x193   : > { %v2282_v5 = vadd.f32 %v2281_v20, %v2280_v62  ;;  %2207 = vst.msk [vmem:[#allocation2 + $0xa8] sm:$0xff] %vm5342_vm1, %v2177_v9  ;;  %2206 = vst.msk [vmem:[#allocation2 + $0xa0] sm:$0xff] %vm5342_vm1, %v2176_v0  ;;  %v1795_v11 = vadd.f32 %v1740_v39, %v5418_v24  ;;  %v2149_v62 = vld [vmem:[#allocation2 + $0xb8] sm:$0xff]  ;;  %v4701_v4 = vadd.f32 %v4588_v58, %v5420_v44  ;;  %v2148_v19 = vld [vmem:[#allocation2 + $0xb0] sm:$0xff] }
 0x194   : > { %v2383_v14 = vsel %vm5342_vm1, %v2336_v40, 0.0  ;;  %v4693_v3 = vld [vmem:[#allocation2 + $0x98] sm:$0xff]  ;;  %v2179_v22 = vadd.f32 %v2149_v62, %v2050_v17  ;;  %v2178_v2 = vadd.f32 %v2148_v19, %v2049_v26  ;;  %v2092_v36 = vadd.f32 %v4366_v41, %v1798_v48  ;;  %v1760_v1 = vpop.f32.mrf.mxu0  ;;  %v5421_v20 = vld [vmem:[#allocation17_spill] sm:$0xff]  ;;  %v5423_v54 = vld [vmem:[#allocation20_spill] sm:$0xff] }
 0x195   : > { %v2384_v27 = vadd.f32 %v2383_v14, %v2382_v37  ;;  %v2284_v35 = vadd.f32 %v2283_v34, %v2282_v5  ;;  %v2089_v39 = vadd.f32 %v4366_v41, %v1795_v11  ;;  %v4717_v58 = vmul.f32 %v4693_v3, %v4693_v3  ;;  %v5422_v37 = vld [vmem:[#allocation22_spill] sm:$0xff] }
 0x196   : > { %v4704_v46 = vld [vmem:[#allocation2 + $0x90] sm:$0xff]  ;;  %v2287_v9 = vsel %vm5342_vm1, %v4693_v3, 0.0  ;;  %2209 = vst.msk [vmem:[#allocation2 + $0xb8] sm:$0xff] %vm5342_vm1, %v2179_v22  ;;  %2208 = vst.msk [vmem:[#allocation2 + $0xb0] sm:$0xff] %vm5342_vm1, %v2178_v2  ;;  %v1797_v40 = vadd.f32 %v1750_v33, %v5421_v20  ;;  %v4731_v18 = vadd.f32 %v3399_v43, %v5422_v37  ;;  %v4735_v31 = vadd.f32 %v1760_v1, %v5423_v54 }
 0x197   : > { %v2285_v7 = vsel %vm5342_vm1, %v4704_v46, 0.0  ;;  %v2338_v17 = vmul.f32 %v4704_v46, %v4704_v46  ;;  %v2386_v26 = vadd.f32 %v2385_v38, %v2384_v27  ;;  %2121 = vst.msk [vmem:[#allocation2 + $0xd0] sm:$0xff] %vm5342_vm1, %v2089_v39  ;;  %2124 = vst.msk [vmem:[#allocation2 + $0xe8] sm:$0xff] %vm5342_vm1, %v2092_v36  ;;  %v2151_v5 = vld [vmem:[#allocation2 + $0xc8] sm:$0xff]  ;;  %v3471_v11 = vmov 0.0  }
 0x198   : > { %v2286_v0 = vadd.f32 %v2285_v7, %v2284_v35  ;;  %v2181_v14 = vadd.f32 %v2151_v5, %v2052_v49  ;;  %v2091_v24 = vadd.f32 %v4366_v41, %v1797_v40  ;;  %2604 = vst.msk [vmem:[%s4713_s7] sm:$0xff] %vm5342_vm1, %v3471_v11  ;;  %2605 = vst.msk [vmem:[%s4713_s7 + $0x8] sm:$0xff] %vm5342_vm1, %v3471_v11  ;;  %v2389_v49 = vsel %vm5342_vm1, %v4717_v58, 0.0  ;;  %v2150_v27 = vld [vmem:[#allocation2 + $0xc0] sm:$0xff] }
 0x199   : > { %v2387_v50 = vsel %vm5342_vm1, %v2338_v17, 0.0  ;;  %2607 = vst.msk [vmem:[%s4713_s7 + $0x10] sm:$0x3] %vm2606_vm4, %v3471_v11  ;;  %2610 = vst.msk [vmem:[%s4713_s7 + $0x28] sm:$0x3] %vm2606_vm4, %v3471_v11  ;;  %v2180_v44 = vadd.f32 %v2150_v27, %v4687_v32  ;;  %v2153_v19 = vld [vmem:[#allocation2 + $0xd8] sm:$0xff]  ;;  %v2094_v22 = vadd.f32 %v4366_v41, %v4731_v18  ;;  %v2093_v1 = vadd.f32 %v4366_v41, %v4735_v31 }
 0x19a   : > { %v2388_v10 = vadd.f32 %v2387_v50, %v2386_v26  ;;  %v4737_v34 = vld [vmem:[#allocation2 + $0xa8] sm:$0xff]  ;;  %v4739_v33 = vld [vmem:[#allocation2 + $0xa0] sm:$0xff]  ;;  %v2288_v43 = vadd.f32 %v2287_v9, %v2286_v0  ;;  %2608 = vst.msk [vmem:[%s4713_s7 + $0x18] sm:$0xff] %vm5342_vm1, %v3471_v11  ;;  %2609 = vst.msk [vmem:[%s4713_s7 + $0x20] sm:$0xff] %vm5342_vm1, %v3471_v11  ;;  %v2183_v36 = vadd.f32 %v2153_v19, %v4701_v4 }
 0x19b   : > { %2611 = vst.msk [vmem:[%s4713_s7 + $0x30] sm:$0xff] %vm5342_vm1, %v3471_v11  ;;  %2612 = vst.msk [vmem:[%s4713_s7 + $0x38] sm:$0xff] %vm5342_vm1, %v3471_v11  ;;  %v2341_v52 = vmul.f32 %v4737_v34, %v4737_v34  ;;  %v2289_v48 = vsel %vm5342_vm1, %v4739_v33, 0.0  ;;  %v2340_v38 = vmul.f32 %v4739_v33, %v4739_v33  ;;  %v2291_v2 = vsel %vm5342_vm1, %v4737_v34, 0.0  ;;  %v5424_v26 = vld [vmem:[#allocation6_spill] sm:$0xff]  ;;  %v5425_v31 = vld [vmem:[#allocation7_spill] sm:$0xff] }
 0x19c   : > { %2613 = vst.msk [vmem:[%s4713_s7 + $0x40] sm:$0x3] %vm2606_vm4, %v3471_v11  ;;  %2616 = vst.msk [vmem:[%s4713_s7 + $0x58] sm:$0x3] %vm2606_vm4, %v3471_v11  ;;  %v2290_v35 = vadd.f32 %v2289_v48, %v2288_v43  ;;  %v2390_v62 = vadd.f32 %v2389_v49, %v2388_v10  ;;  %v2053_v9 = vadd.f32 %v4604_v51, %v5424_v26 }
 0x19d   : > { %2614 = vst.msk [vmem:[%s4713_s7 + $0x48] sm:$0xff] %vm5342_vm1, %v3471_v11  ;;  %2615 = vst.msk [vmem:[%s4713_s7 + $0x50] sm:$0xff] %vm5342_vm1, %v3471_v11  ;;  %v2391_v39 = vsel %vm5342_vm1, %v2340_v38, 0.0  ;;  %v4859_v32 = vld [vmem:[#allocation2 + $0xb8] sm:$0xff]  ;;  %v4861_v17 = vld [vmem:[#allocation2 + $0xb0] sm:$0xff]  ;;  %v2056_v0 = vadd.f32 %v4615_v42, %v4352_v30  ;;  %v2393_v41 = vsel %vm5342_vm1, %v2341_v52, 0.0  ;;  %v2055_v10 = vadd.f32 %v4632_v6, %v5425_v31 }
 0x19e   : > { %2617 = vst.msk [vmem:[%s4713_s7 + $0x60] sm:$0xff] %vm5342_vm1, %v3471_v11  ;;  %2618 = vst.msk [vmem:[%s4713_s7 + $0x68] sm:$0xff] %vm5342_vm1, %v3471_v11  ;;  %v2392_v58 = vadd.f32 %v2391_v39, %v2390_v62  ;;  %v2292_v7 = vadd.f32 %v2291_v2, %v2290_v35  ;;  %v2152_v4 = vld [vmem:[#allocation2 + $0xd0] sm:$0xff]  ;;  %v2343_v20 = vmul.f32 %v4859_v32, %v4859_v32  ;;  %v2293_v40 = vsel %vm5342_vm1, %v4861_v17, 0.0  ;;  %v2155_v51 = vld [vmem:[#allocation2 + $0xe8] sm:$0xff] }
 0x19f   : > { %2619 = vst.msk [vmem:[%s4713_s7 + $0x70] sm:$0x3] %vm2606_vm4, %v3471_v11  ;;  %2622 = vst.msk [vmem:[%s4713_s7 + $0x88] sm:$0x3] %vm2606_vm4, %v3471_v11  ;;  %v2342_v37 = vmul.f32 %v4861_v17, %v4861_v17  ;;  %v2182_v30 = vadd.f32 %v2152_v4, %v2053_v9  ;;  %v2185_v42 = vadd.f32 %v2155_v51, %v2056_v0  ;;  %v2295_v5 = vsel %vm5342_vm1, %v4859_v32, 0.0  ;;  %v5426_v52 = vld [vmem:[#allocation9_spill] sm:$0xff] }
 0x1a0   : > { %2620 = vst.msk [vmem:[%s4713_s7 + $0x78] sm:$0xff] %vm5342_vm1, %v3471_v11  ;;  %2621 = vst.msk [vmem:[%s4713_s7 + $0x80] sm:$0xff] %vm5342_vm1, %v3471_v11  ;;  %v2294_v18 = vadd.f32 %v2293_v40, %v2292_v7  ;;  %v2394_v50 = vadd.f32 %v2393_v41, %v2392_v58  ;;  %v2397_v49 = vsel %vm5342_vm1, %v2343_v20, 0.0  ;;  %v2058_v48 = vadd.f32 %v4642_v28, %v5426_v52  ;;  %v5427_v62 = vld [vmem:[#allocation10_spill] sm:$0xff] }
 0x1a1   : > { %2623 = vst.msk [vmem:[%s4713_s7 + $0x90] sm:$0xff] %vm5342_vm1, %v3471_v11  ;;  %2624 = vst.msk [vmem:[%s4713_s7 + $0x98] sm:$0xff] %vm5342_vm1, %v3471_v11  ;;  %v2395_v54 = vsel %vm5342_vm1, %v2342_v37, 0.0  ;;  %v2057_v6 = vadd.f32 %v4657_v8, %v5427_v62 }
 0x1a2   : > { %2625 = vst.msk [vmem:[%s4713_s7 + $0xa0] sm:$0x3] %vm2606_vm4, %v3471_v11  ;;  %2628 = vst.msk [vmem:[%s4713_s7 + $0xb8] sm:$0x3] %vm2606_vm4, %v3471_v11  ;;  %v2396_v43 = vadd.f32 %v2395_v54, %v2394_v50 }
 0x1a3   : > { %2626 = vst.msk [vmem:[%s4713_s7 + $0xa8] sm:$0xff] %vm5342_vm1, %v3471_v11  ;;  %2627 = vst.msk [vmem:[%s4713_s7 + $0xb0] sm:$0xff] %vm5342_vm1, %v3471_v11 }
 0x1a4   : > { %2629 = vst.msk [vmem:[%s4713_s7 + $0xc0] sm:$0xff] %vm5342_vm1, %v3471_v11  ;;  %2630 = vst.msk [vmem:[%s4713_s7 + $0xc8] sm:$0xff] %vm5342_vm1, %v3471_v11  ;;  %v2398_v35 = vadd.f32 %v2397_v49, %v2396_v43 }
 0x1a5   : > { %2631 = vst.msk [vmem:[%s4713_s7 + $0xd0] sm:$0x3] %vm2606_vm4, %v3471_v11  ;;  %2634 = vst.msk [vmem:[%s4713_s7 + $0xe8] sm:$0x3] %vm2606_vm4, %v3471_v11 }
 0x1a6   : > { %2632 = vst.msk [vmem:[%s4713_s7 + $0xd8] sm:$0xff] %vm5342_vm1, %v3471_v11  ;;  %2633 = vst.msk [vmem:[%s4713_s7 + $0xe0] sm:$0xff] %vm5342_vm1, %v3471_v11 }
 0x1a7   : > { %2635 = vst.msk [vmem:[%s4713_s7 + $0xf0] sm:$0xff] %vm5342_vm1, %v3471_v11  ;;  %2636 = vst.msk [vmem:[%s4713_s7 + $0xf8] sm:$0xff] %vm5342_vm1, %v3471_v11 }
 0x1a8   : > { %2637 = vst.msk [vmem:[%s4713_s7 + $0x100] sm:$0x3] %vm2606_vm4, %v3471_v11  ;;  %2640 = vst.msk [vmem:[%s4713_s7 + $0x118] sm:$0x3] %vm2606_vm4, %v3471_v11 }
 0x1a9   : > { %2638 = vst.msk [vmem:[%s4713_s7 + $0x108] sm:$0xff] %vm5342_vm1, %v3471_v11  ;;  %2639 = vst.msk [vmem:[%s4713_s7 + $0x110] sm:$0xff] %vm5342_vm1, %v3471_v11 }
 0x1aa   : > { %2641 = vst.msk [vmem:[%s4713_s7 + $0x120] sm:$0xff] %vm5342_vm1, %v3471_v11  ;;  %2642 = vst.msk [vmem:[%s4713_s7 + $0x128] sm:$0xff] %vm5342_vm1, %v3471_v11 }
 0x1ab   : > { %2643 = vst.msk [vmem:[%s4713_s7 + $0x130] sm:$0x3] %vm2606_vm4, %v3471_v11  ;;  %2646 = vst.msk [vmem:[%s4713_s7 + $0x148] sm:$0x3] %vm2606_vm4, %v3471_v11 }
 0x1ac   : > { %2644 = vst.msk [vmem:[%s4713_s7 + $0x138] sm:$0xff] %vm5342_vm1, %v3471_v11  ;;  %2645 = vst.msk [vmem:[%s4713_s7 + $0x140] sm:$0xff] %vm5342_vm1, %v3471_v11 }
 0x1ad   : > { %2647 = vst.msk [vmem:[%s4713_s7 + $0x150] sm:$0xff] %vm5342_vm1, %v3471_v11  ;;  %2648 = vst.msk [vmem:[%s4713_s7 + $0x158] sm:$0xff] %vm5342_vm1, %v3471_v11 }
 0x1ae   : > { %2649 = vst.msk [vmem:[%s4713_s7 + $0x160] sm:$0x3] %vm2606_vm4, %v3471_v11  ;;  %2652 = vst.msk [vmem:[%s4713_s7 + $0x178] sm:$0x3] %vm2606_vm4, %v3471_v11 }
 0x1af   : > { %2650 = vst.msk [vmem:[%s4713_s7 + $0x168] sm:$0xff] %vm5342_vm1, %v3471_v11  ;;  %2651 = vst.msk [vmem:[%s4713_s7 + $0x170] sm:$0xff] %vm5342_vm1, %v3471_v11 }
 0x1b0   : > { %2211 = vst.msk [vmem:[#allocation2 + $0xc8] sm:$0xff] %vm5342_vm1, %v2181_v14  ;;  %2123 = vst.msk [vmem:[#allocation2 + $0xe0] sm:$0xff] %vm5342_vm1, %v2091_v24  ;;  %v2296_v24 = vadd.f32 %v2295_v5, %v2294_v18 }
 0x1b1   : > { %2210 = vst.msk [vmem:[#allocation2 + $0xc0] sm:$0xff] %vm5342_vm1, %v2180_v44  ;;  %2126 = vst.msk [vmem:[#allocation2 + $0xf8] sm:$0xff] %vm5342_vm1, %v2094_v22 }
 0x1b2   : > { %2213 = vst.msk [vmem:[#allocation2 + $0xd8] sm:$0xff] %vm5342_vm1, %v2183_v36  ;;  %2125 = vst.msk [vmem:[#allocation2 + $0xf0] sm:$0xff] %vm5342_vm1, %v2093_v1 }
 0x1b3   : > { %2212 = vst.msk [vmem:[#allocation2 + $0xd0] sm:$0xff] %vm5342_vm1, %v2182_v30  ;;  %2215 = vst.msk [vmem:[#allocation2 + $0xe8] sm:$0xff] %vm5342_vm1, %v2185_v42 }
 0x1b7   : > { %v4881_v14 = vld [vmem:[#allocation2 + $0xc8] sm:$0xff]  ;;  %v2154_v11 = vld [vmem:[#allocation2 + $0xe0] sm:$0xff] }
 0x1b8   : > { %v2184_v38 = vadd.f32 %v2154_v11, %v2055_v10  ;;  %v4888_v27 = vld [vmem:[#allocation2 + $0xc0] sm:$0xff]  ;;  %v2157_v44 = vld [vmem:[#allocation2 + $0xf8] sm:$0xff]  ;;  %v2345_v19 = vmul.f32 %v4881_v14, %v4881_v14  ;;  %v2299_v58 = vsel %vm5342_vm1, %v4881_v14, 0.0 }
 0x1b9   : > { %v2297_v22 = vsel %vm5342_vm1, %v4888_v27, 0.0  ;;  %v2344_v2 = vmul.f32 %v4888_v27, %v4888_v27  ;;  %v2187_v28 = vadd.f32 %v2157_v44, %v2058_v48  ;;  %v2156_v39 = vld [vmem:[#allocation2 + $0xf0] sm:$0xff]  ;;  %v4902_v7 = vld [vmem:[#allocation2 + $0xd8] sm:$0xff] }
 0x1ba   : > { %2214 = vst.msk [vmem:[#allocation2 + $0xe0] sm:$0xff] %vm5342_vm1, %v2184_v38  ;;  %v2298_v36 = vadd.f32 %v2297_v22, %v2296_v24  ;;  %v2186_v1 = vadd.f32 %v2156_v39, %v2057_v6  ;;  %v2401_v0 = vsel %vm5342_vm1, %v2345_v19, 0.0  ;;  %v4907_v4 = vld [vmem:[#allocation2 + $0xd0] sm:$0xff]  ;;  %v2347_v41 = vmul.f32 %v4902_v7, %v4902_v7  ;;  %v4915_v18 = vld [vmem:[#allocation2 + $0xe8] sm:$0xff] }
 0x1bb   : > { %v2399_v8 = vsel %vm5342_vm1, %v2344_v2, 0.0  ;;  %2217 = vst.msk [vmem:[#allocation2 + $0xf8] sm:$0xff] %vm5342_vm1, %v2187_v28  ;;  %v2301_v20 = vsel %vm5342_vm1, %v4907_v4, 0.0  ;;  %v2346_v40 = vmul.f32 %v4907_v4, %v4907_v4  ;;  %v2303_v50 = vsel %vm5342_vm1, %v4902_v7, 0.0 }
 0x1bc   : > { %v2400_v26 = vadd.f32 %v2399_v8, %v2398_v35  ;;  %v2300_v9 = vadd.f32 %v2299_v58, %v2298_v36  ;;  %2216 = vst.msk [vmem:[#allocation2 + $0xf0] sm:$0xff] %vm5342_vm1, %v2186_v1  ;;  %v2405_v10 = vsel %vm5342_vm1, %v2347_v41, 0.0  ;;  %v2349_v43 = vmul.f32 %v4915_v18, %v4915_v18 }
 0x1bd   : > { %v2403_v30 = vsel %vm5342_vm1, %v2346_v40, 0.0  ;;  %v2307_v38 = vsel %vm5342_vm1, %v4915_v18, 0.0 }
 0x1be   : > { %v2402_v37 = vadd.f32 %v2401_v0, %v2400_v26  ;;  %v2302_v51 = vadd.f32 %v2301_v20, %v2300_v9  ;;  %v2409_v22 = vsel %vm5342_vm1, %v2349_v43, 0.0 }
 0x1c0   : > { %v2404_v5 = vadd.f32 %v2403_v30, %v2402_v37  ;;  %v2304_v54 = vadd.f32 %v2303_v50, %v2302_v51 }
 0x1c1   : > { %v4920_v42 = vld [vmem:[#allocation2 + $0xe0] sm:$0xff] }
 0x1c2   : > { %v2305_v31 = vsel %vm5342_vm1, %v4920_v42, 0.0  ;;  %v2348_v24 = vmul.f32 %v4920_v42, %v4920_v42  ;;  %v2406_v49 = vadd.f32 %v2405_v10, %v2404_v5  ;;  %v4929_v52 = vld [vmem:[#allocation2 + $0xf8] sm:$0xff] }
 0x1c3   : > { %v2306_v11 = vadd.f32 %v2305_v31, %v2304_v54  ;;  %v4931_v48 = vld [vmem:[#allocation2 + $0xf0] sm:$0xff]  ;;  %v2351_v2 = vmul.f32 %v4929_v52, %v4929_v52  ;;  %v2311_v1 = vsel %vm5342_vm1, %v4929_v52, 0.0 }
 0x1c4   : > { %v2407_v35 = vsel %vm5342_vm1, %v2348_v24, 0.0  ;;  %v2309_v62 = vsel %vm5342_vm1, %v4931_v48, 0.0  ;;  %v2350_v6 = vmul.f32 %v4931_v48, %v4931_v48 }
 0x1c5   : > { %v2408_v44 = vadd.f32 %v2407_v35, %v2406_v49  ;;  %v2308_v19 = vadd.f32 %v2307_v38, %v2306_v11  ;;  %v2413_v26 = vsel %vm5342_vm1, %v2351_v2, 0.0 }
 0x1c6   : > { %v2411_v28 = vsel %vm5342_vm1, %v2350_v6, 0.0 }
 0x1c7   : > { %v2310_v39 = vadd.f32 %v2309_v62, %v2308_v19  ;;  %v2410_v36 = vadd.f32 %v2409_v22, %v2408_v44  ;;  %v3462_v62 = vld [vmem:[%s5312_s2] sm:$0xf]  ;;  %v5428_v44 = vld [vmem:[#allocation8_spill] sm:$0xff] }
 0x1c8   : > { %v2434_v19 = vsub.s32 1, %v5428_v44  ;;  %v2538_v2 = vsub.s32 3, %v5428_v44 }
 0x1c9   : > { %v2312_v58 = vadd.f32 %v2311_v1, %v2310_v39  ;;  %v2412_v8 = vadd.f32 %v2411_v28, %v2410_v36 }
 0x1ca   : > { %v4952_v36 = vrot.slane %v3462_v62, %v2538_v2 }
 0x1cb   : > { %v2313_v9 = vrot.slane %v2312_v58, 4  ;;  %v2414_v0 = vadd.f32 %v2413_v26, %v2412_v8  ;;  %v2470_v8 = vsub.s32 2, %v5428_v44 }
 0x1cd   : > { %v2314_v41 = vadd.f32 %v2313_v9, %v2312_v58  ;;  %v2415_v20 = vrot.slane %v2414_v0, 4 }
 0x1cf   : > { %v2315_v40 = vrot.slane %v2314_v41, 2  ;;  %v2416_v37 = vadd.f32 %v2415_v20, %v2414_v0 }
 0x1d1   : > { %v2316_v51 = vadd.f32 %v2315_v40, %v2314_v41  ;;  %v2417_v50 = vrot.slane %v2416_v37, 2 }
 0x1d3   : > { %v2317_v30 = vrot.slane %v2316_v51, 1  ;;  %v2418_v5 = vadd.f32 %v2417_v50, %v2416_v37 }
 0x1d5   : > { %v2318_v54 = vadd.f32 %v2317_v30, %v2316_v51  ;;  %v2419_v31 = vrot.slane %v2418_v5, 1 }
 0x1d7   : > { %v2319_v10 = vmul.f32 0.00390625, %v2318_v54  ;;  %v2420_v43 = vadd.f32 %v2419_v31, %v2418_v5 }
 0x1d9   : > { %v2421_v24 = vmul.f32 0.00390625, %v2420_v43  ;;  %v2422_v11 = vmul.f32 %v2319_v10, %v2319_v10 }
 0x1db   : > { %v2423_v49 = vsub.f32 %v2421_v24, %v2422_v11 }
 0x1dd   : > { %v2424_v38 = vadd.f32 1e-05, %v2423_v49 }
 0x1df   : > { %3460 = vrsqrt.f32 %v2424_v38 }
 0x1ec   : > { %v3461_v35 = vpop.eup %3460 }
 0x1ed   : > { %v2426_v6 = vmul.f32 %v3462_v62, %v3461_v35 }
 0x1ef   : > { %v2427_v22 = vmul.f32 %v2426_v6, %v2319_v10  ;;  %v2435_v28 = vrot.slane %v2426_v6, %v2434_v19 }
 0x1f1   : > { %v2429_v39 = vrot.slane %v2427_v22, 7  ;;  %v2436_v1 = vmul.f32 %v2435_v28, %v4401_v57  ;;  %v2437_v58 = vmul.f32 %v2435_v28, %v4410_v60  ;;  %v2438_v9 = vmul.f32 %v2435_v28, %v4459_v45 }
 0x1f2   : > { %v2439_v0 = vmul.f32 %v2435_v28, %v4443_v59  ;;  %v2440_v41 = vmul.f32 %v2435_v28, %v4488_v23  ;;  %v2441_v20 = vmul.f32 %v2435_v28, %v4472_v25  ;;  %v2442_v40 = vmul.f32 %v2435_v28, %v4521_v47 }
 0x1f3   : > { %v2431_v26 = vsub.f32 %v3462_v62, %v2429_v39  ;;  %v2443_v37 = vmul.f32 %v2435_v28, %v4502_v55  ;;  %v2444_v51 = vmul.f32 %v2435_v28, %v4550_v15  ;;  %v2445_v57 = vmul.f32 %v2435_v28, %v4535_v13 }
 0x1f4   : > { %v2446_v60 = vmul.f32 %v2435_v28, %v4580_v53  ;;  %v2447_v50 = vmul.f32 %v2435_v28, %v4567_v12  ;;  %v2448_v45 = vmul.f32 %v2435_v28, %v4610_v21  ;;  %v2449_v59 = vmul.f32 %v2435_v28, %v4594_v61 }
 0x1f5   : > { %v2450_v23 = vmul.f32 %v2435_v28, %v4638_v16  ;;  %v2451_v25 = vmul.f32 %v2435_v28, %v4626_v29  ;;  %v2452_v47 = vmul.f32 %v2435_v28, %v4673_v56  ;;  %v2453_v55 = vmul.f32 %v2435_v28, %v4666_v63 }
 0x1f6   : > { %v2454_v15 = vmul.f32 %v2435_v28, %v4704_v46  ;;  %v2455_v13 = vmul.f32 %v2435_v28, %v4693_v3  ;;  %v2471_v30 = vrot.slane %v2431_v26, %v2470_v8  ;;  %v2456_v53 = vmul.f32 %v2435_v28, %v4739_v33 }
 0x1f7   : > { %v2457_v12 = vmul.f32 %v2435_v28, %v4737_v34  ;;  %v2458_v21 = vmul.f32 %v2435_v28, %v4861_v17  ;;  %v2459_v61 = vmul.f32 %v2435_v28, %v4859_v32  ;;  %v2460_v16 = vmul.f32 %v2435_v28, %v4888_v27 }
 0x1f8   : > { %v2461_v29 = vmul.f32 %v2435_v28, %v4881_v14  ;;  %v2462_v56 = vmul.f32 %v2435_v28, %v4907_v4  ;;  %v2463_v63 = vmul.f32 %v2435_v28, %v4902_v7  ;;  %v2464_v46 = vmul.f32 %v2435_v28, %v4920_v42 }
 0x1f9   : > { %v2465_v3 = vmul.f32 %v2435_v28, %v4915_v18  ;;  %v2466_v33 = vmul.f32 %v2435_v28, %v4931_v48  ;;  %v2467_v34 = vmul.f32 %v2435_v28, %v4929_v52  ;;  %v4987_v5 = vadd.f32 %v2471_v30, %v2436_v1 }
 0x1fa   : > { %v4989_v17 = vadd.f32 %v2471_v30, %v2437_v58  ;;  %v4991_v32 = vadd.f32 %v2471_v30, %v2438_v9  ;;  %v4993_v27 = vadd.f32 %v2471_v30, %v2439_v0  ;;  %v4995_v14 = vadd.f32 %v2471_v30, %v2440_v41 }
 0x1fb   : > { %v4997_v4 = vadd.f32 %v2471_v30, %v2441_v20  ;;  %v4999_v7 = vadd.f32 %v2471_v30, %v2442_v40  ;;  %v5001_v42 = vadd.f32 %v2471_v30, %v2443_v37  ;;  %v5003_v18 = vadd.f32 %v2471_v30, %v2444_v51 }
 0x1fc   : > { %v5005_v48 = vadd.f32 %v2471_v30, %v2445_v57  ;;  %v5007_v52 = vadd.f32 %v2471_v30, %v2446_v60  ;;  %v5009_v54 = vadd.f32 %v2471_v30, %v2447_v50  ;;  %v5011_v31 = vadd.f32 %v2471_v30, %v2448_v45 }
 0x1fd   : > { %v5013_v10 = vadd.f32 %v2471_v30, %v2449_v59  ;;  %v5015_v43 = vadd.f32 %v2471_v30, %v2450_v23  ;;  %v5017_v24 = vadd.f32 %v2471_v30, %v2451_v25  ;;  %v5019_v11 = vadd.f32 %v2471_v30, %v2452_v47 }
 0x1fe   : > { %v5021_v49 = vadd.f32 %v2471_v30, %v2453_v55  ;;  %v5023_v38 = vadd.f32 %v2471_v30, %v2454_v15  ;;  %v5025_v35 = vadd.f32 %v2471_v30, %v2455_v13  ;;  %v5027_v62 = vadd.f32 %v2471_v30, %v2456_v53 }
 0x1ff   : > { %v5029_v6 = vadd.f32 %v2471_v30, %v2457_v12  ;;  %v5031_v44 = vadd.f32 %v2471_v30, %v2458_v21  ;;  %v5033_v19 = vadd.f32 %v2471_v30, %v2459_v61  ;;  %v5035_v22 = vadd.f32 %v2471_v30, %v2460_v16 }
 0x200   : > { %v5037_v2 = vadd.f32 %v2471_v30, %v2461_v29  ;;  %v5039_v28 = vadd.f32 %v2471_v30, %v2462_v56  ;;  %v5041_v39 = vadd.f32 %v2471_v30, %v2463_v63  ;;  %v5043_v1 = vadd.f32 %v2471_v30, %v2464_v46 }
 0x201   : > { %v5045_v58 = vadd.f32 %v2471_v30, %v2465_v3  ;;  %v5047_v8 = vadd.f32 %v2471_v30, %v2466_v33  ;;  %v5049_v26 = vadd.f32 %v2471_v30, %v2467_v34  ;;  %vm2504_vm5 = vcmp.ge.f32.partialorder %v4987_v5, 0.0 }
 0x202   : > { %5429 = vst [vmem:[#allocation11_spill] sm:$0xff] %v5037_v2  ;;  %5430 = vst [vmem:[#allocation12_spill] sm:$0xff] %v5039_v28  ;;  %vm2505_vm6 = vcmp.ge.f32.partialorder %v4989_v17, 0.0  ;;  %vm2506_vm7 = vcmp.ge.f32.partialorder %v4991_v32, 0.0  ;;  %vm2507_vm8 = vcmp.ge.f32.partialorder %v4993_v27, 0.0  ;;  %vm2508_vm9 = vcmp.ge.f32.partialorder %v4995_v14, 0.0 }
 0x203   : > { %5431 = vst [vmem:[#allocation13_spill] sm:$0xff] %v5041_v39  ;;  %5432 = vst [vmem:[#allocation15_spill] sm:$0xff] %v5045_v58  ;;  %vm2509_vm10 = vcmp.ge.f32.partialorder %v4997_v4, 0.0  ;;  %vm2510_vm11 = vcmp.ge.f32.partialorder %v4999_v7, 0.0  ;;  %vm2511_vm12 = vcmp.ge.f32.partialorder %v5001_v42, 0.0  ;;  %vm2512_vm13 = vcmp.ge.f32.partialorder %v5003_v18, 0.0 }
 0x204   : > { %5433 = vst [vmem:[#allocation19_spill] sm:$0xff] %v5047_v8  ;;  %vm2513_vm14 = vcmp.ge.f32.partialorder %v5005_v48, 0.0  ;;  %vm2514_vm15 = vcmp.ge.f32.partialorder %v5007_v52, 0.0  ;;  %vm2515_vm0 = vcmp.ge.f32.partialorder %v5009_v54, 0.0  ;;  %v2540_v9 = vmul.f32 %v4952_v36, %v4987_v5 }
 0x205   : > { %v2541_v0 = vmul.f32 %v4952_v36, %v4989_v17  ;;  %v2542_v41 = vmul.f32 %v4952_v36, %v4991_v32  ;;  %v2543_v20 = vmul.f32 %v4952_v36, %v4993_v27  ;;  %v2544_v40 = vmul.f32 %v4952_v36, %v4995_v14 }
 0x206   : > { %v2545_v37 = vmul.f32 %v4952_v36, %v4997_v4  ;;  %v2546_v51 = vmul.f32 %v4952_v36, %v4999_v7  ;;  %v2547_v57 = vmul.f32 %v4952_v36, %v5001_v42  ;;  %v2548_v60 = vmul.f32 %v4952_v36, %v5003_v18 }
 0x207   : > { %v2549_v50 = vmul.f32 %v4952_v36, %v5005_v48  ;;  %v2550_v45 = vmul.f32 %v4952_v36, %v5007_v52  ;;  %v2551_v59 = vmul.f32 %v4952_v36, %v5009_v54  ;;  %v2552_v23 = vmul.f32 %v4952_v36, %v5011_v31 }
 0x208   : > { %v2553_v25 = vmul.f32 %v4952_v36, %v5013_v10  ;;  %v2554_v47 = vmul.f32 %v4952_v36, %v5015_v43  ;;  %v2555_v55 = vmul.f32 %v4952_v36, %v5017_v24  ;;  %vm2532_vm2 = vcmp.ge.f32.partialorder %v5043_v1, 0.0 }
 0x209   : > { %vm2533_vm3 = vcmp.ge.f32.partialorder %v5045_v58, 0.0  ;;  %vm2534_vm4 = vcmp.ge.f32.partialorder %v5047_v8, 0.0  ;;  %vm2535_vm1 = vcmp.ge.f32.partialorder %v5049_v26, 0.0  ;;  %v2556_v15 = vmul.f32 %v4952_v36, %v5019_v11 }
 0x20a   : > { %v2557_v13 = vmul.f32 %v4952_v36, %v5021_v49  ;;  %v2558_v30 = vmul.f32 %v4952_v36, %v5023_v38  ;;  %v2559_v53 = vmul.f32 %v4952_v36, %v5025_v35  ;;  %v2560_v12 = vmul.f32 %v4952_v36, %v5027_v62 }
 0x20b   : > { %v2561_v21 = vmul.f32 %v4952_v36, %v5029_v6  ;;  %v2562_v61 = vmul.f32 %v4952_v36, %v5031_v44  ;;  %v2563_v16 = vmul.f32 %v4952_v36, %v5033_v19  ;;  %v2564_v29 = vmul.f32 %v4952_v36, %v5035_v22 }
 0x20c   : > { %v2565_v56 = vmul.f32 %v4952_v36, %v5037_v2  ;;  %v2566_v63 = vmul.f32 %v4952_v36, %v5039_v28  ;;  %v2567_v46 = vmul.f32 %v4952_v36, %v5041_v39  ;;  %v2568_v3 = vmul.f32 %v4952_v36, %v5043_v1 }
 0x20d   : > { %v2569_v33 = vmul.f32 %v4952_v36, %v5045_v58  ;;  %v2570_v34 = vmul.f32 %v4952_v36, %v5047_v8  ;;  %v2571_v2 = vmul.f32 %v4952_v36, %v5049_v26  ;;  %v2572_v28 = vsel %vm2504_vm5, %v4987_v5, %v2540_v9  ;;  %v5477_v9 = vld [vmem:[#allocation19_spill] sm:$0xff] }
 0x20e   : > { %v2573_v39 = vsel %vm2505_vm6, %v4989_v17, %v2541_v0  ;;  %v2574_v58 = vsel %vm2506_vm7, %v4991_v32, %v2542_v41  ;;  %v2575_v8 = vsel %vm2507_vm8, %v4993_v27, %v2543_v20  ;;  %v2576_v36 = vsel %vm2508_vm9, %v4995_v14, %v2544_v40 }
 0x20f   : > { %v2577_v5 = vsel %vm2509_vm10, %v4997_v4, %v2545_v37  ;;  %v2578_v17 = vsel %vm2510_vm11, %v4999_v7, %v2546_v51  ;;  %v2579_v32 = vsel %vm2511_vm12, %v5001_v42, %v2547_v57  ;;  %vm5434_vm5 = vcmask 31744  }
 0x210   : > { %2653 = vst.msk [vmem:[%s4713_s7 + $0x1] sm:$0xff] %vm5434_vm5, %v2572_v28  ;;  %vm5435_vm6 = vmmov %vm5434_vm5  ;;  %v2580_v27 = vsel %vm2512_vm13, %v5003_v18, %v2548_v60  ;;  %v2581_v14 = vsel %vm2513_vm14, %v5005_v48, %v2549_v50  ;;  %v2582_v4 = vsel %vm2514_vm15, %v5007_v52, %v2550_v45  ;;  %v2583_v7 = vsel %vm2515_vm0, %v5009_v54, %v2551_v59  ;;  %v5470_v28 = vld [vmem:[#allocation13_spill] sm:$0xff] }
 0x211   : > { %2654 = vst.msk [vmem:[%s4713_s7 + $0x9] sm:$0xff] %vm5435_vm6, %v2573_v39  ;;  %vm5436_vm7 = vmmov %vm5434_vm5  ;;  %vm5442_vm13 = vcmp.ge.f32.partialorder %v5011_v31, 0.0  ;;  %vm5443_vm14 = vcmp.ge.f32.partialorder %v5013_v10, 0.0  ;;  %vm5444_vm15 = vcmp.ge.f32.partialorder %v5015_v43, 0.0  ;;  %vm5445_vm0 = vcmp.ge.f32.partialorder %v5017_v24, 0.0 }
 0x212   : > { %2655 = vst.msk [vmem:[%s4713_s7 + $0x19] sm:$0xff] %vm5436_vm7, %v2574_v58  ;;  %vm5437_vm8 = vmmov %vm5434_vm5  ;;  %v2584_v42 = vsel %vm5442_vm13, %v5011_v31, %v2552_v23  ;;  %v2585_v18 = vsel %vm5443_vm14, %v5013_v10, %v2553_v25  ;;  %v2586_v48 = vsel %vm5444_vm15, %v5015_v43, %v2554_v47  ;;  %v2587_v52 = vsel %vm5445_vm0, %v5017_v24, %v2555_v55  ;;  %v5476_v58 = vld [vmem:[#allocation15_spill] sm:$0xff] }
 0x213   : > { %2656 = vst.msk [vmem:[%s4713_s7 + $0x21] sm:$0xff] %vm5437_vm8, %v2575_v8  ;;  %vm5438_vm9 = vmmov %vm5434_vm5  ;;  %v2601_v8 = vsel %vm2533_vm3, %v5476_v58, %v2569_v33  ;;  %v2602_v0 = vsel %vm2534_vm4, %v5477_v9, %v2570_v34  ;;  %v2603_v41 = vsel %vm2535_vm1, %v5049_v26, %v2571_v2 }
 0x214   : > { %2657 = vst.msk [vmem:[%s4713_s7 + $0x31] sm:$0xff] %vm5438_vm9, %v2576_v36  ;;  %vm5439_vm10 = vmmov %vm5434_vm5  ;;  %vm5449_vm9 = vcmp.ge.f32.partialorder %v5019_v11, 0.0 }
 0x215   : > { %2658 = vst.msk [vmem:[%s4713_s7 + $0x39] sm:$0xff] %vm5439_vm10, %v2577_v5  ;;  %vm5440_vm11 = vmmov %vm5434_vm5  ;;  %v2588_v54 = vsel %vm5449_vm9, %v5019_v11, %v2556_v15  ;;  %vm5450_vm10 = vcmp.ge.f32.partialorder %v5021_v49, 0.0 }
 0x216   : > { %2659 = vst.msk [vmem:[%s4713_s7 + $0x49] sm:$0xff] %vm5440_vm11, %v2578_v17  ;;  %vm5441_vm12 = vmmov %vm5434_vm5  ;;  %v2589_v31 = vsel %vm5450_vm10, %v5021_v49, %v2557_v13  ;;  %vm5451_vm11 = vcmp.ge.f32.partialorder %v5023_v38, 0.0 }
 0x217   : > { %2660 = vst.msk [vmem:[%s4713_s7 + $0x51] sm:$0xff] %vm5441_vm12, %v2579_v32  ;;  %vm5446_vm6 = vmmov %vm5434_vm5  ;;  %v2590_v10 = vsel %vm5451_vm11, %v5023_v38, %v2558_v30  ;;  %vm5452_vm12 = vcmp.ge.f32.partialorder %v5025_v35, 0.0 }
 0x218   : > { %2661 = vst.msk [vmem:[%s4713_s7 + $0x61] sm:$0xff] %vm5434_vm5, %v2580_v27  ;;  %vm5447_vm7 = vmmov %vm5434_vm5  ;;  %v2591_v43 = vsel %vm5452_vm12, %v5025_v35, %v2559_v53 }
 0x219   : > { %2662 = vst.msk [vmem:[%s4713_s7 + $0x69] sm:$0xff] %vm5446_vm6, %v2581_v14  ;;  %vm5448_vm8 = vmmov %vm5434_vm5  ;;  %vm5458_vm6 = vcmp.ge.f32.partialorder %v5029_v6, 0.0 }
 0x21a   : > { %2663 = vst.msk [vmem:[%s4713_s7 + $0x79] sm:$0xff] %vm5447_vm7, %v2582_v4  ;;  %vm5453_vm13 = vmmov %vm5434_vm5  ;;  %v2593_v11 = vsel %vm5458_vm6, %v5029_v6, %v2561_v21  ;;  %vm5459_vm7 = vcmp.ge.f32.partialorder %v5031_v44, 0.0 }
 0x21b   : > { %2664 = vst.msk [vmem:[%s4713_s7 + $0x81] sm:$0xff] %vm5448_vm8, %v2583_v7  ;;  %vm5454_vm14 = vmmov %vm5434_vm5  ;;  %v2594_v49 = vsel %vm5459_vm7, %v5031_v44, %v2562_v61  ;;  %vm5460_vm8 = vcmp.ge.f32.partialorder %v5033_v19, 0.0  ;;  %v5468_v44 = vld [vmem:[#allocation12_spill] sm:$0xff] }
 0x21c   : > { %2665 = vst.msk [vmem:[%s4713_s7 + $0x91] sm:$0xff] %vm5453_vm13, %v2584_v42  ;;  %vm5455_vm15 = vmmov %vm5434_vm5  ;;  %v2595_v38 = vsel %vm5460_vm8, %v5033_v19, %v2563_v16  ;;  %vm5465_vm13 = vcmp.ge.f32.partialorder %v5035_v22, 0.0 }
 0x21d   : > { %2666 = vst.msk [vmem:[%s4713_s7 + $0x99] sm:$0xff] %vm5454_vm14, %v2585_v18  ;;  %vm5456_vm0 = vmmov %vm5434_vm5  ;;  %vm5457_vm5 = vcmp.ge.f32.partialorder %v5027_v62, 0.0  ;;  %v2596_v35 = vsel %vm5465_vm13, %v5035_v22, %v2564_v29  ;;  %v2600_v22 = vsel %vm2532_vm2, %v5043_v1, %v2568_v3 }
 0x21e   : > { %2667 = vst.msk [vmem:[%s4713_s7 + $0xa9] sm:$0xff] %vm5455_vm15, %v2586_v48  ;;  %v2592_v24 = vsel %vm5457_vm5, %v5027_v62, %v2560_v12  ;;  %vm5461_vm9 = vmmov %vm5456_vm0  ;;  %v5466_v62 = vld [vmem:[#allocation11_spill] sm:$0xff]  ;;  %vm5469_vm15 = vcmp.ge.f32.partialorder %v5468_v44, 0.0 }
 0x21f   : > { %2668 = vst.msk [vmem:[%s4713_s7 + $0xb1] sm:$0xff] %vm5456_vm0, %v2587_v52  ;;  %vm5462_vm10 = vmmov %vm5456_vm0  ;;  %vm5467_vm14 = vcmp.ge.f32.partialorder %v5466_v62, 0.0  ;;  %v2598_v19 = vsel %vm5469_vm15, %v5468_v44, %v2566_v63 }
 0x220   : > { %2669 = vst.msk [vmem:[%s4713_s7 + $0xc1] sm:$0xff] %vm5461_vm9, %v2588_v54  ;;  %vm5463_vm11 = vmmov %vm5456_vm0  ;;  %v2597_v6 = vsel %vm5467_vm14, %v5466_v62, %v2565_v56 }
 0x221   : > { %2670 = vst.msk [vmem:[%s4713_s7 + $0xc9] sm:$0xff] %vm5462_vm10, %v2589_v31  ;;  %vm5464_vm12 = vmmov %vm5456_vm0  ;;  %vm5471_vm0 = vcmp.ge.f32.partialorder %v5470_v28, 0.0 }
 0x222   : > { %2671 = vst.msk [vmem:[%s4713_s7 + $0xd9] sm:$0xff] %vm5463_vm11, %v2590_v10  ;;  %v2599_v39 = vsel %vm5471_vm0, %v5470_v28, %v2567_v46  ;;  %vm5472_vm5 = vmmov %vm5461_vm9 }
 0x223   : > { %2672 = vst.msk [vmem:[%s4713_s7 + $0xe1] sm:$0xff] %vm5464_vm12, %v2591_v43  ;;  %vm5473_vm6 = vmmov %vm5472_vm5 }
 0x224   : > { %2673 = vst.msk [vmem:[%s4713_s7 + $0xf1] sm:$0xff] %vm5472_vm5, %v2592_v24  ;;  %vm5474_vm7 = vmmov %vm5472_vm5 }
 0x225   : > { %2674 = vst.msk [vmem:[%s4713_s7 + $0xf9] sm:$0xff] %vm5473_vm6, %v2593_v11  ;;  %vm5475_vm8 = vmmov %vm5472_vm5 }
 0x226   : > { %2675 = vst.msk [vmem:[%s4713_s7 + $0x109] sm:$0xff] %vm5474_vm7, %v2594_v49  ;;  %vm5478_vm9 = vmmov %vm5472_vm5 }
 0x227   : > { %2676 = vst.msk [vmem:[%s4713_s7 + $0x111] sm:$0xff] %vm5475_vm8, %v2595_v38  ;;  %vm5479_vm10 = vmmov %vm5472_vm5 }
 0x228   : > { %2677 = vst.msk [vmem:[%s4713_s7 + $0x121] sm:$0xff] %vm5478_vm9, %v2596_v35  ;;  %vm5480_vm11 = vmmov %vm5472_vm5 }
 0x229   : > { %2678 = vst.msk [vmem:[%s4713_s7 + $0x129] sm:$0xff] %vm5479_vm10, %v2597_v6  ;;  %vm5481_vm12 = vmmov %vm5472_vm5 }
 0x22a   : > { %2679 = vst.msk [vmem:[%s4713_s7 + $0x139] sm:$0xff] %vm5480_vm11, %v2598_v19  ;;  %vm5482_vm2 = vmmov %vm5472_vm5 }
 0x22b   : > { %2680 = vst.msk [vmem:[%s4713_s7 + $0x141] sm:$0xff] %vm5481_vm12, %v2599_v39  ;;  %vm5483_vm13 = vmmov %vm5482_vm2 }
 0x22c   : > { %2681 = vst.msk [vmem:[%s4713_s7 + $0x151] sm:$0xff] %vm5482_vm2, %v2600_v22  ;;  %vm5484_vm3 = vmmov %vm5482_vm2 }
 0x22d   : > { %2682 = vst.msk [vmem:[%s4713_s7 + $0x159] sm:$0xff] %vm5483_vm13, %v2601_v8  ;;  %vm5485_vm14 = vmmov %vm5482_vm2 }
 0x22e   : > { %2683 = vst.msk [vmem:[%s4713_s7 + $0x169] sm:$0xff] %vm5484_vm3, %v2602_v0 }
 0x22f   : > { %2684 = vst.msk [vmem:[%s4713_s7 + $0x171] sm:$0xff] %vm5485_vm14, %v2603_v41 }
 0x230 PF: > { %s13_s12 = sadd.s32 1, %s3469_s12  }
 0x231   : > { %p10_p4 = scmp.ge.s32.totalorder %s13_s12, 4  }
 0x233   :  { %12 = sbr.rel (!%p10_p4) target bundleno = 1 (0x1), region = 68 }

</bundles_post_ra>
